<compile_context>
chip_gen: v5e
topology: v5e:2x2
jax: 0.10.0
libtpu: 0.0.40
codegen_flags: <defaults>
</compile_context>

<pallas_src>
import jax
import jax.numpy as jnp
from jax.experimental import pallas as pl
from jax.experimental.pallas import tpu as pltpu


def _round_up(x, m):
    return ((x + m - 1) // m) * m


def text_encoder_kernel(alpha_ref, x_ref, w1_ref, w2_ref, wp_ref, bp_ref, o_ref):
    x_bf = x_ref[...]                                             # (TILE_B, 768) bf16

    # Adapter: Linear -> ReLU -> Linear -> ReLU (bf16 operands, f32 MXU accumulation)
    h = jnp.dot(x_bf, w1_ref[...], preferred_element_type=jnp.float32)   # (TILE_B, H_pad)
    h = jnp.maximum(h, 0.0).astype(jnp.bfloat16)
    a = jnp.dot(h, w2_ref[...], preferred_element_type=jnp.float32)      # (TILE_B, 768)
    a = jnp.maximum(a, 0.0)

    # Residual blend with learnable scalar alpha (SMEM scalar), f32 precision:
    #   y = alpha*a + (1-alpha)*x  ==  x + alpha*(a - x)
    x32 = x_bf.astype(jnp.float32)
    alpha = alpha_ref[0]
    y = x32 + alpha * (a - x32)

    # Projection: Linear(768 -> C_out_pad) + bias + ReLU (lane-dense output)
    out = jnp.dot(y.astype(jnp.bfloat16), wp_ref[...],
                  preferred_element_type=jnp.float32)                    # (TILE_B, C_out_pad)
    o_ref[...] = jnp.maximum(out + bp_ref[...], 0.0)


def prepare_text_encoder_params(alpha, w1, w2, wp, bp):
    """One-time parameter prep, hoisted out of the per-call hot path.

    Pads the hidden dim (192 -> 256) and output dim (64 -> 128) to lane-dense
    multiples of 128 (exact: ReLU(0)=0 and zero weight rows/cols contribute
    nothing) and casts weights to bf16 (halves the dominant weight DMA, bf16
    MXU path).  Call once after loading / updating the adapter weights and
    reuse the returned dict for every forward.
    """
    C_in, H = w1.shape
    C_out = wp.shape[1]
    assert w2.shape == (H, C_in) and wp.shape[0] == C_in

    H_pad = _round_up(H, 128)          # 192 -> 256
    C_out_pad = _round_up(C_out, 128)  # 64  -> 128

    w1_p = jnp.pad(jnp.asarray(w1, jnp.float32),
                   ((0, 0), (0, H_pad - H))).astype(jnp.bfloat16)
    w2_p = jnp.pad(jnp.asarray(w2, jnp.float32),
                   ((0, H_pad - H), (0, 0))).astype(jnp.bfloat16)
    wp_p = jnp.pad(jnp.asarray(wp, jnp.float32),
                   ((0, 0), (0, C_out_pad - C_out))).astype(jnp.bfloat16)
    bp_p = jnp.pad(jnp.reshape(jnp.asarray(bp, jnp.float32), (1, C_out)),
                   ((0, 0), (0, C_out_pad - C_out)))
    alpha_p = jnp.asarray(alpha, jnp.float32).reshape((1,))

    return {
        "alpha": alpha_p,      # (1,) f32, SMEM scalar
        "w1": w1_p,            # (C_in, H_pad) bf16
        "w2": w2_p,            # (H_pad, C_in) bf16
        "wp": wp_p,            # (C_in, C_out_pad) bf16
        "bp": bp_p,            # (1, C_out_pad) f32
        "c_in": C_in,
        "c_out": C_out,
    }


def text_encoder_forward(text_feat, params, *, tile_b=512):
    """text_feat: (B, 768) CLIP text features.  params: prepare_text_encoder_params()."""
    B, C_in = text_feat.shape
    assert C_in == params["c_in"]
    H_pad = params["w1"].shape[1]
    C_out_pad = params["wp"].shape[1]
    C_out = params["c_out"]

    # Batch tiling: multiples of 16 (bf16 sublane packing), no larger than the
    # padded batch, and capped at ~B/2 so the batch axis yields >= 2 grid steps
    # when B allows -> the "parallel" axis actually shards across both
    # TensorCores on v7x.
    tile_b = max(16, min(_round_up(tile_b, 16), _round_up(B, 16)))
    half_b = _round_up(-(-B // 2), 16)
    tile_b = min(tile_b, max(16, half_b))
    B_pad = _round_up(B, tile_b)
    grid_b = B_pad // tile_b

    # Activations cast to bf16 once at the boundary (halves x DMA; the
    # f32->bf16 pack also leaves the kernel's VALU path, which matters on v5e).
    x_p = jnp.pad(text_feat.astype(jnp.bfloat16), ((0, B_pad - B), (0, 0)))

    # Advisory cost (flops fixed: middle matmul contracts over H_pad).
    flops = 2 * B_pad * C_in * (2 * H_pad + C_out_pad) + 8 * B_pad * C_in
    bytes_accessed = (x_p.size * 2
                      + params["w1"].size * 2 + params["w2"].size * 2
                      + params["wp"].size * 2 + params["bp"].size * 4
                      + B_pad * C_out_pad * 4)

    out = pl.pallas_call(
        text_encoder_kernel,
        out_shape=jax.ShapeDtypeStruct((B_pad, C_out_pad), jnp.float32),
        grid=(grid_b,),
        in_specs=[
            pl.BlockSpec(memory_space=pltpu.MemorySpace.SMEM),        # alpha (1,)
            pl.BlockSpec((tile_b, C_in), lambda i: (i, 0)),           # x tile (bf16)
            pl.BlockSpec((C_in, H_pad), lambda i: (0, 0)),            # W1 (VMEM-resident)
            pl.BlockSpec((H_pad, C_in), lambda i: (0, 0)),            # W2 (VMEM-resident)
            pl.BlockSpec((C_in, C_out_pad), lambda i: (0, 0)),        # Wp (VMEM-resident)
            pl.BlockSpec((1, C_out_pad), lambda i: (0, 0)),           # bias (VMEM-resident)
        ],
        out_specs=pl.BlockSpec((tile_b, C_out_pad), lambda i: (i, 0)),
        compiler_params=pltpu.CompilerParams(
            dimension_semantics=("parallel",)),
        cost_estimate=pl.CostEstimate(
            flops=flops, transcendentals=0, bytes_accessed=bytes_accessed),
    )(params["alpha"], x_p, params["w1"], params["w2"], params["wp"], params["bp"])

    # Slice off batch / lane padding.
    return out[:B, :C_out]


def reference_forward(text_feat, alpha, w1, w2, wp, bp):
    """Pure-f32 reference (exact PyTorch semantics)."""
    h = jnp.maximum(text_feat @ w1, 0.0)
    a = jnp.maximum(h @ w2, 0.0)
    al = jnp.asarray(alpha, jnp.float32).reshape(())
    y = al * a + (1.0 - al) * text_feat
    return jnp.maximum(y @ wp + jnp.reshape(bp, (1, -1)), 0.0)


def reference_forward_bf16(text_feat, alpha, w1, w2, wp, bp):
    """Reference using the same bf16-operand / f32-accumulation scheme as the kernel."""
    xb = text_feat.astype(jnp.bfloat16)
    x32 = xb.astype(jnp.float32)
    h = jnp.maximum(jnp.dot(xb, w1.astype(jnp.bfloat16),
                            preferred_element_type=jnp.float32), 0.0)
    a = jnp.maximum(jnp.dot(h.astype(jnp.bfloat16), w2.astype(jnp.bfloat16),
                            preferred_element_type=jnp.float32), 0.0)
    al = jnp.asarray(alpha, jnp.float32).reshape(())
    y = x32 + al * (a - x32)
    out = jnp.dot(y.astype(jnp.bfloat16), wp.astype(jnp.bfloat16),
                  preferred_element_type=jnp.float32) + jnp.reshape(bp, (1, -1))
    return jnp.maximum(out, 0.0)


if __name__ == "__main__":
    # TODO(synk): clip.tokenize / clip.encode_text (frozen pretrained ViT-L/14
    # text tower) are not reproduced; the kernel starts from the 768-d CLIP
    # text features.
    B = 8                 # number of texts in the batch
    C_IN = 768            # CLIP ViT-L/14 text feature dim
    C_RED = C_IN // 4     # Adapter reduction = 4 -> 192
    C_OUT = 64            # out_channels

    key = jax.random.PRNGKey(0)
    k_x, k_w1, k_w2, k_wp, k_bp = jax.random.split(key, 5)

    # Deterministic synthetic parameters (stored as (in, out) = W.T of nn.Linear).
    text_feat = jax.random.normal(k_x, (B, C_IN), dtype=jnp.float32)
    w1 = jax.random.normal(k_w1, (C_IN, C_RED), dtype=jnp.float32) * 0.02
    w2 = jax.random.normal(k_w2, (C_RED, C_IN), dtype=jnp.float32) * 0.02
    wp = jax.random.normal(k_wp, (C_IN, C_OUT), dtype=jnp.float32) * 0.02
    bp = jax.random.normal(k_bp, (1, C_OUT), dtype=jnp.float32) * 0.02
    alpha = jnp.array(0.2, dtype=jnp.float32)   # adapter_alpha init value

    # One-time weight prep (padding + bf16 cast) -- hoisted off the hot path.
    params = prepare_text_encoder_params(alpha, w1, w2, wp, bp)

    out = jax.block_until_ready(text_encoder_forward(text_feat, params))

    ref32 = reference_forward(text_feat, alpha, w1, w2, wp, bp)
    ref16 = reference_forward_bf16(text_feat, alpha, w1, w2, wp, bp)

    assert out.shape == (B, C_OUT)
    # Tight check against a reference using the same bf16 scheme as the kernel.
    assert jnp.allclose(out, ref16, atol=1e-2, rtol=1e-2), "mismatch vs bf16 reference"
    # Loose check against the exact f32 module semantics (bf16 quantization).
    assert jnp.allclose(out, ref32, atol=5e-2, rtol=5e-2), "mismatch vs f32 reference"

    print("KERNEL_OK")
</pallas_src>

<mosaic_0001>
module attributes {stable_mosaic.version = 11 : i64} {
  func.func @text_encoder_kernel(%arg0: i32, %arg1: memref<1xf32, #tpu.memory_space<smem>>, %arg2: memref<16x768xbf16, #tpu.memory_space<vmem>>, %arg3: memref<768x256xbf16, #tpu.memory_space<vmem>>, %arg4: memref<256x768xbf16, #tpu.memory_space<vmem>>, %arg5: memref<768x128xbf16, #tpu.memory_space<vmem>>, %arg6: memref<1x128xf32, #tpu.memory_space<vmem>>, %arg7: memref<16x128xf32, #tpu.memory_space<vmem>>) attributes {dimension_semantics = [#tpu.dimension_semantics<parallel>], iteration_bounds = array<i64: 1>, scalar_prefetch = 0 : i64, scratch_operands = 0 : i64, tpu.core_type = #tpu.core_type<tc>, window_params = [{transform_indices = @transform_0, window_bounds = array<i64: 1>}, {transform_indices = @transform_1, window_bounds = array<i64: 16, 768>}, {pipeline_mode = #tpu.pipeline_mode<synchronous>, transform_indices = @transform_2, window_bounds = array<i64: 768, 256>}, {pipeline_mode = #tpu.pipeline_mode<synchronous>, transform_indices = @transform_3, window_bounds = array<i64: 256, 768>}, {pipeline_mode = #tpu.pipeline_mode<synchronous>, transform_indices = @transform_4, window_bounds = array<i64: 768, 128>}, {pipeline_mode = #tpu.pipeline_mode<synchronous>, transform_indices = @transform_5, window_bounds = array<i64: 1, 128>}, {transform_indices = @transform_6, window_bounds = array<i64: 16, 128>}]} {
    %c0 = arith.constant 0 : index
    %c0_0 = arith.constant 0 : index
    %0 = vector.load %arg2[%c0, %c0_0] : memref<16x768xbf16, #tpu.memory_space<vmem>>, vector<16x768xbf16>
    %c0_1 = arith.constant 0 : index
    %c0_2 = arith.constant 0 : index
    %1 = vector.load %arg3[%c0_1, %c0_2] : memref<768x256xbf16, #tpu.memory_space<vmem>>, vector<768x256xbf16>
    %cst = arith.constant dense<0.000000e+00> : vector<16x256xf32>
    %2 = tpu.matmul %0, %1, %cst {dimension_numbers = #tpu.dot_dimension_numbers<[1], [0], [0], [1], [0, 0, 1, 1], [], []>} : vector<16x768xbf16>, vector<768x256xbf16>, vector<16x256xf32> -> vector<16x256xf32>
    %cst_3 = arith.constant 0.000000e+00 : f32
    %3 = vector.broadcast %cst_3 : f32 to vector<16x256xf32>
    %4 = arith.maximumf %2, %3 : vector<16x256xf32>
    %5 = arith.truncf %4 : vector<16x256xf32> to vector<16x256xbf16>
    %c0_4 = arith.constant 0 : index
    %c0_5 = arith.constant 0 : index
    %6 = vector.load %arg4[%c0_4, %c0_5] : memref<256x768xbf16, #tpu.memory_space<vmem>>, vector<256x768xbf16>
    %cst_6 = arith.constant dense<0.000000e+00> : vector<16x768xf32>
    %7 = tpu.matmul %5, %6, %cst_6 {dimension_numbers = #tpu.dot_dimension_numbers<[1], [0], [0], [1], [0, 0, 1, 1], [], []>} : vector<16x256xbf16>, vector<256x768xbf16>, vector<16x768xf32> -> vector<16x768xf32>
    %cst_7 = arith.constant 0.000000e+00 : f32
    %8 = vector.broadcast %cst_7 : f32 to vector<16x768xf32>
    %9 = arith.maximumf %7, %8 : vector<16x768xf32>
    %10 = arith.extf %0 : vector<16x768xbf16> to vector<16x768xf32>
    %c0_8 = arith.constant 0 : index
    %11 = memref.load %arg1[%c0_8] : memref<1xf32, #tpu.memory_space<smem>>
    %12 = arith.subf %9, %10 : vector<16x768xf32>
    %13 = vector.broadcast %11 : f32 to vector<16x768xf32>
    %14 = arith.mulf %13, %12 : vector<16x768xf32>
    %15 = arith.addf %10, %14 : vector<16x768xf32>
    %16 = arith.truncf %15 : vector<16x768xf32> to vector<16x768xbf16>
    %c0_9 = arith.constant 0 : index
    %c0_10 = arith.constant 0 : index
    %17 = vector.load %arg5[%c0_9, %c0_10] : memref<768x128xbf16, #tpu.memory_space<vmem>>, vector<768x128xbf16>
    %cst_11 = arith.constant dense<0.000000e+00> : vector<16x128xf32>
    %18 = tpu.matmul %16, %17, %cst_11 {dimension_numbers = #tpu.dot_dimension_numbers<[1], [0], [0], [1], [0, 0, 1, 1], [], []>} : vector<16x768xbf16>, vector<768x128xbf16>, vector<16x128xf32> -> vector<16x128xf32>
    %c0_12 = arith.constant 0 : index
    %c0_13 = arith.constant 0 : index
    %19 = vector.load %arg6[%c0_12, %c0_13] : memref<1x128xf32, #tpu.memory_space<vmem>>, vector<1x128xf32>
    %20 = vector.broadcast %19 : vector<1x128xf32> to vector<16x128xf32>
    %21 = arith.addf %18, %20 : vector<16x128xf32>
    %cst_14 = arith.constant 0.000000e+00 : f32
    %22 = vector.broadcast %cst_14 : f32 to vector<16x128xf32>
    %23 = arith.maximumf %21, %22 : vector<16x128xf32>
    %c0_15 = arith.constant 0 : index
    %c0_16 = arith.constant 0 : index
    %24 = vector.load %arg7[%c0_15, %c0_16] : memref<16x128xf32, #tpu.memory_space<vmem>>, vector<16x128xf32>
    tpu.vector_store %arg7[%c0_15, %c0_16], %23 {strides = array<i32>} : memref<16x128xf32, #tpu.memory_space<vmem>>, vector<16x128xf32>,
    return
  }
  func.func @transform_0(%arg0: i32) -> i32 {
    %c0_i32 = arith.constant 0 : i32
    %c0_i32_0 = arith.constant 0 : i32
    return %c0_i32 : i32
  }
  func.func @transform_1(%arg0: i32) -> (i32, i32) {
    %c0_i32 = arith.constant 0 : i32
    %c0_i32_0 = arith.constant 0 : i32
    return %arg0, %c0_i32 : i32, i32
  }
  func.func @transform_2(%arg0: i32) -> (i32, i32) {
    %c0_i32 = arith.constant 0 : i32
    %c0_i32_0 = arith.constant 0 : i32
    %c0_i32_1 = arith.constant 0 : i32
    return %c0_i32, %c0_i32_0 : i32, i32
  }
  func.func @transform_3(%arg0: i32) -> (i32, i32) {
    %c0_i32 = arith.constant 0 : i32
    %c0_i32_0 = arith.constant 0 : i32
    %c0_i32_1 = arith.constant 0 : i32
    return %c0_i32, %c0_i32_0 : i32, i32
  }
  func.func @transform_4(%arg0: i32) -> (i32, i32) {
    %c0_i32 = arith.constant 0 : i32
    %c0_i32_0 = arith.constant 0 : i32
    %c0_i32_1 = arith.constant 0 : i32
    return %c0_i32, %c0_i32_0 : i32, i32
  }
  func.func @transform_5(%arg0: i32) -> (i32, i32) {
    %c0_i32 = arith.constant 0 : i32
    %c0_i32_0 = arith.constant 0 : i32
    %c0_i32_1 = arith.constant 0 : i32
    return %c0_i32, %c0_i32_0 : i32, i32
  }
  func.func @transform_6(%arg0: i32) -> (i32, i32) {
    %c0_i32 = arith.constant 0 : i32
    %c0_i32_0 = arith.constant 0 : i32
    return %arg0, %c0_i32 : i32, i32
  }
}

</mosaic_0001>

<bundles_post_ra>
// kernel: tpu_custom_call.1
= control target key start
LH: loop header
LB: loop body
LE: loop exit
PB: predicated region body
PF: predicated region fallthrough
CT: control target
= control target key end

     0   :  { %12 = vsyncpa [#allocation4], 0  ;;  %s3676_s0 = inlined_call_operand.<no memory space> [shape: f32[1], index: 0, kind: input, shape index: {}]   ;;  %s3677_s1 = inlined_call_operand.hbm [shape: bf16[16,768], index: 1, kind: input, shape index: {}]   ;;  %s3678_s2 = inlined_call_operand.hbm [shape: bf16[768,256], index: 2, kind: input, shape index: {}]   ;;  %s3679_s3 = inlined_call_operand.hbm [shape: bf16[256,768], index: 3, kind: input, shape index: {}]   ;;  %s3680_s4 = inlined_call_operand.hbm [shape: bf16[768,128], index: 4, kind: input, shape index: {}]   ;;  %s3681_s5 = inlined_call_operand.vmem [shape: f32[1,128], index: 5, kind: input, shape index: {}]   ;;  %s3682_s6 = inlined_call_operand.hbm [shape: f32[16,128], index: 6, kind: output, shape index: {}]  }
   0x1   :  { %13 = vsyncpa [#allocation7], 0 }
   0x2   :  { %14 = vsyncpa [#allocation10], 0  ;;  %s35_s23 = sshll.u32 %s3678_s2, 4  ;;  %s36_s23 = int_to_ptr.hbm [resolvable:$true] %s35_s23 }
   0x3   :  { %15 = vsyncpa [#allocation5], 0  ;;  %s3553_s24 = smov [#allocation6]   ;;  %s22_s28 = sshll.u32 %s3677_s1, 4  ;;  %s23_s28 = int_to_ptr.hbm [resolvable:$true] %s22_s28 }
   0x4   :  { %s37_s25 = sshll.u32 %s3553_s24, 4  ;;  %s3554_s29 = smov 128   ;;  %s38_s25 = int_to_ptr.vmem [resolvable:$true] %s37_s25 }
   0x5   :  { %s3555_s30 = smov 8   ;;  %s3556_s7 = smov [#allocation3]  }
   0x6   :  { %43 = dma.hbm_to_vmem [thread:$0]  %s36_s23, 12288, %s38_s25, [#allocation7], %s3554_s29, %s3554_s29, %s3555_s30  }
   0x7   :  { %s24_s8 = sshll.u32 %s3556_s7, 4  ;;  %s3557_s2 = smov 384   ;;  %s25_s8 = int_to_ptr.vmem [resolvable:$true] %s24_s8 }
   0x8   :  { %s3558_s9 = smov 24   ;;  %s48_s12 = sshll.u32 %s3679_s3, 4  ;;  %s49_s12 = int_to_ptr.hbm [resolvable:$true] %s48_s12 }
   0x9   :  { %30 = dma.hbm_to_vmem [thread:$0]  %s23_s28, 768, %s25_s8, [#allocation4], %s3557_s2, %s3557_s2, %s3558_s9  }
   0xa   :  { %s3559_s13 = smov [#allocation8]   ;;  %s61_s16 = sshll.u32 %s3680_s4, 4  ;;  %s62_s16 = int_to_ptr.hbm [resolvable:$true] %s61_s16 }
   0xb   :  { %s50_s1 = sshll.u32 %s3559_s13, 4  ;;  %s3560_s17 = smov [#allocation9]   ;;  %s51_s1 = int_to_ptr.vmem [resolvable:$true] %s50_s1 }
   0xc   :  { %56 = dma.hbm_to_vmem [thread:$0]  %s49_s12, 12288, %s51_s1, [#allocation7], %s3557_s2, %s3557_s2, %s3558_s9  }
   0xd   :  { %s63_s18 = sshll.u32 %s3560_s17, 4  ;;  %s3561_s19 = smov 64   ;;  %s64_s18 = int_to_ptr.vmem [resolvable:$true] %s63_s18 }
   0xe   :  { %s3562_s20 = smov 4  }
   0xf   :  { %69 = dma.hbm_to_vmem [thread:$0]  %s62_s16, 6144, %s64_s18, [#allocation10], %s3561_s19, %s3561_s19, %s3562_s20  }
  0x10   :  { %3545 = dma.done.wait [#allocation4], 768  }
  0x11   :  { %3546 = vsyncadd [#allocation4], 4294966528 }
  0x12   :  { %3547 = dma.done.wait [#allocation7], 24576  }
  0x13   :  { %3548 = vsyncadd [#allocation7], 4294942720 }
  0x14   :  { %3549 = dma.done.wait [#allocation10], 6144  }
  0x15   :  { %3550 = vsyncadd [#allocation10], 4294961152  ;;  %v2265_v0 = vld [vmem:[#allocation6 + $0x70] sm:$0xf]  ;;  %v3188_v1 = vld [vmem:[#allocation6 + $0x74] sm:$0xf0] }
  0x16   :  { %v2329_v2 = vld [vmem:[#allocation6 + $0xf0] sm:$0xf]  ;;  %v2266_v3 = vor.u32 %v3188_v1, %v2265_v0  ;;  %v3204_v4 = vld [vmem:[#allocation6 + $0xf4] sm:$0xf0]  ;;  %v2257_v11 = vld [vmem:[#allocation6 + $0x60] sm:$0xf] }
  0x17   :  { %v2393_v5 = vld [vmem:[#allocation6 + $0x170] sm:$0xf]  ;;  %v3220_v6 = vld [vmem:[#allocation6 + $0x174] sm:$0xf0]  ;;  %v2330_v7 = vor.u32 %v3204_v4, %v2329_v2  ;;  %v3186_v13 = vld [vmem:[#allocation6 + $0x64] sm:$0xf0] }
  0x18   :  { %v2394_v8 = vor.u32 %v3220_v6, %v2393_v5  ;;  %v2457_v9 = vld [vmem:[#allocation6 + $0x1f0] sm:$0xf]  ;;  %v3236_v10 = vld [vmem:[#allocation6 + $0x1f4] sm:$0xf0]  ;;  %700 = vmatpush.bf16.msra.mxu0 %v2266_v3  ;;  %v2321_v14 = vld [vmem:[#allocation6 + $0xe0] sm:$0xf]  ;;  %v2258_v16 = vor.u32 %v3186_v13, %v2257_v11 }
  0x19   :  { %v2458_v12 = vor.u32 %v3236_v10, %v2457_v9  ;;  %v3202_v15 = vld [vmem:[#allocation6 + $0xe4] sm:$0xf0]  ;;  %714 = vmatpush.bf16.msra.mxu1 %v2330_v7  ;;  %v2385_v18 = vld [vmem:[#allocation6 + $0x160] sm:$0xf]  ;;  %v2249_v23 = vld [vmem:[#allocation6 + $0x50] sm:$0xf] }
  0x1a   :  { %728 = vmatpush.bf16.msra.mxu2 %v2394_v8  ;;  %v2322_v17 = vor.u32 %v3202_v15, %v2321_v14  ;;  %v3218_v19 = vld [vmem:[#allocation6 + $0x164] sm:$0xf0]  ;;  %v2449_v20 = vld [vmem:[#allocation6 + $0x1e0] sm:$0xf]  ;;  %v3184_v24 = vld [vmem:[#allocation6 + $0x54] sm:$0xf0] }
  0x1b   :  { %742 = vmatpush.bf16.msra.mxu3 %v2458_v12  ;;  %v2386_v21 = vor.u32 %v3218_v19, %v2385_v18  ;;  %v3234_v22 = vld [vmem:[#allocation6 + $0x1e4] sm:$0xf0]  ;;  %v2313_v26 = vld [vmem:[#allocation6 + $0xd0] sm:$0xf]  ;;  %v3200_v27 = vld [vmem:[#allocation6 + $0xd4] sm:$0xf0]  ;;  %v2250_v29 = vor.u32 %v3184_v24, %v2249_v23 }
  0x1c   :  { %v2450_v25 = vor.u32 %v3234_v22, %v2449_v20  ;;  %v2377_v28 = vld [vmem:[#allocation6 + $0x150] sm:$0xf]  ;;  %701 = vmatpush.bf16.msra.mxu0 %v2258_v16  ;;  %v3216_v30 = vld [vmem:[#allocation6 + $0x154] sm:$0xf0]  ;;  %v2314_v33 = vor.u32 %v3200_v27, %v2313_v26  ;;  %v2241_v35 = vld [vmem:[#allocation6 + $0x40] sm:$0xf] }
  0x1d   :  { %v2441_v31 = vld [vmem:[#allocation6 + $0x1d0] sm:$0xf]  ;;  %v3232_v32 = vld [vmem:[#allocation6 + $0x1d4] sm:$0xf0]  ;;  %715 = vmatpush.bf16.msra.mxu1 %v2322_v17  ;;  %v2378_v34 = vor.u32 %v3216_v30, %v2377_v28  ;;  %v3182_v36 = vld [vmem:[#allocation6 + $0x44] sm:$0xf0] }
  0x1e   :  { %729 = vmatpush.bf16.msra.mxu2 %v2386_v21  ;;  %v2305_v37 = vld [vmem:[#allocation6 + $0xc0] sm:$0xf]  ;;  %v2442_v38 = vor.u32 %v3232_v32, %v2441_v31  ;;  %v3198_v39 = vld [vmem:[#allocation6 + $0xc4] sm:$0xf0]  ;;  %v2242_v44 = vor.u32 %v3182_v36, %v2241_v35  ;;  %v2233_v47 = vld [vmem:[#allocation6 + $0x30] sm:$0xf] }
  0x1f   :  { %743 = vmatpush.bf16.msra.mxu3 %v2450_v25  ;;  %v2369_v40 = vld [vmem:[#allocation6 + $0x140] sm:$0xf]  ;;  %v3214_v41 = vld [vmem:[#allocation6 + $0x144] sm:$0xf0]  ;;  %v2306_v45 = vor.u32 %v3198_v39, %v2305_v37  ;;  %v3180_v48 = vld [vmem:[#allocation6 + $0x34] sm:$0xf0] }
  0x20   :  { %v2433_v42 = vld [vmem:[#allocation6 + $0x1c0] sm:$0xf]  ;;  %v3230_v43 = vld [vmem:[#allocation6 + $0x1c4] sm:$0xf0]  ;;  %702 = vmatpush.bf16.msra.mxu0 %v2250_v29  ;;  %v2370_v46 = vor.u32 %v3214_v41, %v2369_v40  ;;  %v2297_v49 = vld [vmem:[#allocation6 + $0xb0] sm:$0xf]  ;;  %v2234_v56 = vor.u32 %v3180_v48, %v2233_v47 }
  0x21   :  { %716 = vmatpush.bf16.msra.mxu1 %v2314_v33  ;;  %v2434_v50 = vor.u32 %v3230_v43, %v2433_v42  ;;  %v3196_v51 = vld [vmem:[#allocation6 + $0xb4] sm:$0xf0]  ;;  %v2361_v52 = vld [vmem:[#allocation6 + $0x130] sm:$0xf]  ;;  %v2225_v59 = vld [vmem:[#allocation6 + $0x20] sm:$0xf] }
  0x22   :  { %730 = vmatpush.bf16.msra.mxu2 %v2378_v34  ;;  %v3212_v53 = vld [vmem:[#allocation6 + $0x134] sm:$0xf0]  ;;  %v2425_v54 = vld [vmem:[#allocation6 + $0x1b0] sm:$0xf]  ;;  %v2298_v57 = vor.u32 %v3196_v51, %v2297_v49  ;;  %v3178_v60 = vld [vmem:[#allocation6 + $0x24] sm:$0xf0] }
  0x23   :  { %744 = vmatpush.bf16.msra.mxu3 %v2442_v38  ;;  %v3228_v55 = vld [vmem:[#allocation6 + $0x1b4] sm:$0xf0]  ;;  %v2362_v58 = vor.u32 %v3212_v53, %v2361_v52  ;;  %v2289_v61 = vld [vmem:[#allocation6 + $0xa0] sm:$0xf]  ;;  %v3194_v63 = vld [vmem:[#allocation6 + $0xa4] sm:$0xf0]  ;;  %v2226_v4 = vor.u32 %v3178_v60, %v2225_v59 }
  0x24   :  { %703 = vmatpush.bf16.msra.mxu0 %v2242_v44  ;;  %v2426_v62 = vor.u32 %v3228_v55, %v2425_v54  ;;  %v2353_v0 = vld [vmem:[#allocation6 + $0x120] sm:$0xf]  ;;  %v3210_v1 = vld [vmem:[#allocation6 + $0x124] sm:$0xf0]  ;;  %v2290_v5 = vor.u32 %v3194_v63, %v2289_v61  ;;  %v2217_v7 = vld [vmem:[#allocation6 + $0x10] sm:$0xf] }
  0x25   :  { %717 = vmatpush.bf16.msra.mxu1 %v2306_v45  ;;  %v2417_v2 = vld [vmem:[#allocation6 + $0x1a0] sm:$0xf]  ;;  %v3226_v3 = vld [vmem:[#allocation6 + $0x1a4] sm:$0xf0]  ;;  %v2354_v6 = vor.u32 %v3210_v1, %v2353_v0  ;;  %v3176_v8 = vld [vmem:[#allocation6 + $0x14] sm:$0xf0] }
  0x26   :  { %731 = vmatpush.bf16.msra.mxu2 %v2370_v46  ;;  %v2281_v9 = vld [vmem:[#allocation6 + $0x90] sm:$0xf]  ;;  %v2418_v10 = vor.u32 %v3226_v3, %v2417_v2  ;;  %v3192_v11 = vld [vmem:[#allocation6 + $0x94] sm:$0xf0]  ;;  %v2218_v16 = vor.u32 %v3176_v8, %v2217_v7  ;;  %v2209_v17 = vld [vmem:[#allocation6] sm:$0xf] }
  0x27   :  { %745 = vmatpush.bf16.msra.mxu3 %v2434_v50  ;;  %v2345_v12 = vld [vmem:[#allocation6 + $0x110] sm:$0xf]  ;;  %v3208_v13 = vld [vmem:[#allocation6 + $0x114] sm:$0xf0]  ;;  %v3174_v18 = vld [vmem:[#allocation6 + $0x4] sm:$0xf0]  ;;  %v2282_v19 = vor.u32 %v3192_v11, %v2281_v9 }
  0x28   :  { %704 = vmatpush.bf16.msra.mxu0 %v2234_v56  ;;  %v2409_v14 = vld [vmem:[#allocation6 + $0x190] sm:$0xf]  ;;  %v3224_v15 = vld [vmem:[#allocation6 + $0x194] sm:$0xf0]  ;;  %v2346_v20 = vor.u32 %v3208_v13, %v2345_v12  ;;  %v2273_v21 = vld [vmem:[#allocation6 + $0x80] sm:$0xf]  ;;  %v2210_v31 = vor.u32 %v3174_v18, %v2209_v17 }
  0x29   :  { %718 = vmatpush.bf16.msra.mxu1 %v2298_v57  ;;  %v3190_v22 = vld [vmem:[#allocation6 + $0x84] sm:$0xf0]  ;;  %v2337_v23 = vld [vmem:[#allocation6 + $0x100] sm:$0xf]  ;;  %v2410_v24 = vor.u32 %v3224_v15, %v2409_v14  ;;  %v2521_v28 = vld [vmem:[#allocation6 + $0x270] sm:$0xf] }
  0x2a   :  { %732 = vmatpush.bf16.msra.mxu2 %v2362_v58  ;;  %v3206_v25 = vld [vmem:[#allocation6 + $0x104] sm:$0xf0]  ;;  %v2401_v26 = vld [vmem:[#allocation6 + $0x180] sm:$0xf]  ;;  %v3252_v29 = vld [vmem:[#allocation6 + $0x274] sm:$0xf0]  ;;  %v2274_v35 = vor.u32 %v3190_v22, %v2273_v21 }
  0x2b   :  { %746 = vmatpush.bf16.msra.mxu3 %v2426_v62  ;;  %v3222_v27 = vld [vmem:[#allocation6 + $0x184] sm:$0xf0]  ;;  %v2585_v30 = vld [vmem:[#allocation6 + $0x2f0] sm:$0xf]  ;;  %v3268_v32 = vld [vmem:[#allocation6 + $0x2f4] sm:$0xf0]  ;;  %v2338_v36 = vor.u32 %v3206_v25, %v2337_v23  ;;  %v2522_v40 = vor.u32 %v3252_v29, %v2521_v28 }
  0x2c   :  { %705 = vmatpush.bf16.msra.mxu0 %v2226_v4  ;;  %v3187_v33 = vld [vmem:[#allocation6 + $0x74] sm:$0xf]  ;;  %v2267_v34 = vld [vmem:[#allocation6 + $0x78] sm:$0xf0]  ;;  %v2402_v39 = vor.u32 %v3222_v27, %v2401_v26  ;;  %v2513_v41 = vld [vmem:[#allocation6 + $0x260] sm:$0xf]  ;;  %v2586_v43 = vor.u32 %v3268_v32, %v2585_v30 }
  0x2d   :  { %719 = vmatpush.bf16.msra.mxu1 %v2290_v5  ;;  %v3203_v37 = vld [vmem:[#allocation6 + $0xf4] sm:$0xf]  ;;  %v2331_v38 = vld [vmem:[#allocation6 + $0xf8] sm:$0xf0]  ;;  %v3250_v42 = vld [vmem:[#allocation6 + $0x264] sm:$0xf0]  ;;  %v2270_v44 = vor.u32 %v3187_v33, %v2267_v34 }
  0x2e   :  { %733 = vmatpush.bf16.msra.mxu2 %v2354_v6  ;;  %v2577_v45 = vld [vmem:[#allocation6 + $0x2e0] sm:$0xf]  ;;  %v3266_v46 = vld [vmem:[#allocation6 + $0x2e4] sm:$0xf0]  ;;  %v3185_v47 = vld [vmem:[#allocation6 + $0x64] sm:$0xf]  ;;  %v2334_v48 = vor.u32 %v3203_v37, %v2331_v38  ;;  %v2514_v55 = vor.u32 %v3250_v42, %v2513_v41 }
  0x2f   :  { %747 = vmatpush.bf16.msra.mxu3 %v2418_v10  ;;  %v2259_v49 = vld [vmem:[#allocation6 + $0x68] sm:$0xf0]  ;;  %v3201_v50 = vld [vmem:[#allocation6 + $0xe4] sm:$0xf]  ;;  %v2505_v52 = vld [vmem:[#allocation6 + $0x250] sm:$0xf]  ;;  %v2578_v60 = vor.u32 %v3266_v46, %v2577_v45 }
  0x30   :  { %706 = vmatpush.bf16.msra.mxu0 %v2218_v16  ;;  %v2323_v51 = vld [vmem:[#allocation6 + $0xe8] sm:$0xf0]  ;;  %v2185_v53 = vld [vmem:[#allocation3] sm:$0xf]  ;;  %v3170_v54 = vld [vmem:[#allocation3 + $0x14] sm:$0xf0]  ;;  %v2262_v61 = vor.u32 %v3185_v47, %v2259_v49 }
  0x31   :  { %720 = vmatpush.bf16.msra.mxu1 %v2282_v19  ;;  %v3248_v56 = vld [vmem:[#allocation6 + $0x254] sm:$0xf0]  ;;  %v2569_v57 = vld [vmem:[#allocation6 + $0x2d0] sm:$0xf]  ;;  %v3614_v59 = vor.u32 %v3170_v54, %v2185_v53  ;;  %v3183_v62 = vld [vmem:[#allocation6 + $0x54] sm:$0xf]  ;;  %v2326_v1 = vor.u32 %v3201_v50, %v2323_v51 }
  0x32   :  { %734 = vmatpush.bf16.msra.mxu2 %v2346_v20  ;;  %v3264_v58 = vld [vmem:[#allocation6 + $0x2d4] sm:$0xf0]  ;;  %v2251_v63 = vld [vmem:[#allocation6 + $0x58] sm:$0xf0]  ;;  %v3199_v0 = vld [vmem:[#allocation6 + $0xd4] sm:$0xf]  ;;  %v2506_v9 = vor.u32 %v3248_v56, %v2505_v52 }
  0x33   :  { %748 = vmatpush.bf16.msra.mxu3 %v2410_v24  ;;  %v2315_v2 = vld [vmem:[#allocation6 + $0xd8] sm:$0xf0]  ;;  %v3167_v3 = vld [vmem:[#allocation3 + $0x4] sm:$0xf]  ;;  %v2187_v4 = vld [vmem:[#allocation3 + $0x18] sm:$0xf0]  ;;  %v2570_v12 = vor.u32 %v3264_v58, %v2569_v57  ;;  %v2254_v13 = vor.u32 %v3183_v62, %v2251_v63 }
  0x34   :  { %707 = vmatpush.bf16.msra.mxu0 %v2210_v31  ;;  %v3617_v5 = vor.u32 %v3167_v3, %v2187_v4  ;;  %v2193_v6 = vld [vmem:[#allocation3 + $0x8] sm:$0xf]  ;;  %v3171_v7 = vld [vmem:[#allocation3 + $0x1c] sm:$0xf0]  ;;  %v3168_v8 = vld [vmem:[#allocation3 + $0xc] sm:$0xf]  ;;  %v2318_v18 = vor.u32 %v3199_v0, %v2315_v2 }
  0x35   :  { %721 = vmatpush.bf16.msra.mxu1 %v2274_v35  ;;  %v3619_v10 = vor.u32 %v3171_v7, %v2193_v6  ;;  %v2195_v11 = vld [vmem:[#allocation3 + $0x20] sm:$0xf0]  ;;  %v2497_v14 = vld [vmem:[#allocation6 + $0x240] sm:$0xf]  ;;  %v3246_v15 = vld [vmem:[#allocation6 + $0x244] sm:$0xf0] }
  0x36   :  { %735 = vmatpush.bf16.msra.mxu2 %v2338_v36  ;;  %v2561_v16 = vld [vmem:[#allocation6 + $0x2c0] sm:$0xf]  ;;  %v3621_v17 = vor.u32 %v3168_v8, %v2195_v11  ;;  %v3262_v19 = vld [vmem:[#allocation6 + $0x2c4] sm:$0xf0]  ;;  %v3181_v20 = vld [vmem:[#allocation6 + $0x44] sm:$0xf]  ;;  %v2498_v24 = vor.u32 %v3246_v15, %v2497_v14 }
  0x37   :  { %749 = vmatpush.bf16.msra.mxu3 %v2402_v39  ;;  %708 = vmatmul.bf16.vlgmr.msra.gmra.mxu0 %v3614_v59  ;;  %v2243_v21 = vld [vmem:[#allocation6 + $0x48] sm:$0xf0]  ;;  %v3197_v22 = vld [vmem:[#allocation6 + $0xc4] sm:$0xf]  ;;  %v2562_v25 = vor.u32 %v3262_v19, %v2561_v16  ;;  %v2489_v27 = vld [vmem:[#allocation6 + $0x230] sm:$0xf] }
  0x38   :  { %756 = vmatpush.bf16.msrb.mxu0 %v2522_v40  ;;  %722 = vmatmul.bf16.vlgmr.msra.gmra.mxu1 %v3617_v5  ;;  %v2307_v23 = vld [vmem:[#allocation6 + $0xc8] sm:$0xf0]  ;;  %v2246_v26 = vor.u32 %v3181_v20, %v2243_v21  ;;  %v3244_v28 = vld [vmem:[#allocation6 + $0x234] sm:$0xf0]  ;;  %v2553_v29 = vld [vmem:[#allocation6 + $0x2b0] sm:$0xf] }
  0x39   :  { %770 = vmatpush.bf16.msrb.mxu1 %v2586_v43  ;;  %736 = vmatmul.bf16.vlgmr.msra.gmra.mxu2 %v3619_v10  ;;  %v2310_v30 = vor.u32 %v3197_v22, %v2307_v23  ;;  %v3260_v31 = vld [vmem:[#allocation6 + $0x2b4] sm:$0xf0]  ;;  %v3179_v32 = vld [vmem:[#allocation6 + $0x34] sm:$0xf]  ;;  %v2235_v33 = vld [vmem:[#allocation6 + $0x38] sm:$0xf0]  ;;  %v2490_v36 = vor.u32 %v3244_v28, %v2489_v27 }
  0x3a   :  { %784 = vmatpush.bf16.msrb.mxu2 %v2270_v44  ;;  %750 = vmatmul.bf16.vlgmr.msra.gmra.mxu3 %v3621_v17  ;;  %v3195_v34 = vld [vmem:[#allocation6 + $0xb4] sm:$0xf]  ;;  %v2299_v35 = vld [vmem:[#allocation6 + $0xb8] sm:$0xf0]  ;;  %v2554_v37 = vor.u32 %v3260_v31, %v2553_v29  ;;  %v2238_v38 = vor.u32 %v3179_v32, %v2235_v33  ;;  %v2481_v39 = vld [vmem:[#allocation6 + $0x220] sm:$0xf] }
  0x3b   :  { %798 = vmatpush.bf16.msrb.mxu3 %v2334_v48  ;;  %v3242_v40 = vld [vmem:[#allocation6 + $0x224] sm:$0xf0]  ;;  %v2545_v41 = vld [vmem:[#allocation6 + $0x2a0] sm:$0xf]  ;;  %v2302_v42 = vor.u32 %v3195_v34, %v2299_v35  ;;  %v3177_v44 = vld [vmem:[#allocation6 + $0x24] sm:$0xf] }
  0x3c   :  { %757 = vmatpush.bf16.msrb.mxu0 %v2514_v55  ;;  %v3258_v43 = vld [vmem:[#allocation6 + $0x2a4] sm:$0xf0]  ;;  %v2227_v45 = vld [vmem:[#allocation6 + $0x28] sm:$0xf0]  ;;  %v3193_v46 = vld [vmem:[#allocation6 + $0xa4] sm:$0xf]  ;;  %v2482_v48 = vor.u32 %v3242_v40, %v2481_v39 }
  0x3d   :  { %771 = vmatpush.bf16.msrb.mxu1 %v2578_v60  ;;  %v2291_v47 = vld [vmem:[#allocation6 + $0xa8] sm:$0xf0]  ;;  %v2546_v49 = vor.u32 %v3258_v43, %v2545_v41  ;;  %v2230_v50 = vor.u32 %v3177_v44, %v2227_v45  ;;  %v2473_v51 = vld [vmem:[#allocation6 + $0x210] sm:$0xf]  ;;  %v3240_v52 = vld [vmem:[#allocation6 + $0x214] sm:$0xf0] }
  0x3e   :  { %785 = vmatpush.bf16.msrb.mxu2 %v2262_v61  ;;  %v2537_v53 = vld [vmem:[#allocation6 + $0x290] sm:$0xf]  ;;  %v2294_v54 = vor.u32 %v3193_v46, %v2291_v47  ;;  %v3256_v55 = vld [vmem:[#allocation6 + $0x294] sm:$0xf0]  ;;  %v3175_v56 = vld [vmem:[#allocation6 + $0x14] sm:$0xf]  ;;  %v2474_v61 = vor.u32 %v3240_v52, %v2473_v51 }
  0x3f   :  { %799 = vmatpush.bf16.msrb.mxu3 %v2326_v1  ;;  %v2219_v57 = vld [vmem:[#allocation6 + $0x18] sm:$0xf0]  ;;  %v3191_v58 = vld [vmem:[#allocation6 + $0x94] sm:$0xf]  ;;  %v2465_v62 = vld [vmem:[#allocation6 + $0x200] sm:$0xf]  ;;  %v2538_v1 = vor.u32 %v3256_v55, %v2537_v53 }
  0x40   :  { %758 = vmatpush.bf16.msrb.mxu0 %v2506_v9  ;;  %v2283_v60 = vld [vmem:[#allocation6 + $0x98] sm:$0xf0]  ;;  %v3238_v63 = vld [vmem:[#allocation6 + $0x204] sm:$0xf0]  ;;  %v2529_v0 = vld [vmem:[#allocation6 + $0x280] sm:$0xf]  ;;  %v2222_v2 = vor.u32 %v3175_v56, %v2219_v57 }
  0x41   :  { %772 = vmatpush.bf16.msrb.mxu1 %v2570_v12  ;;  %v3254_v3 = vld [vmem:[#allocation6 + $0x284] sm:$0xf0]  ;;  %v3173_v4 = vld [vmem:[#allocation6 + $0x4] sm:$0xf]  ;;  %v2211_v6 = vld [vmem:[#allocation6 + $0x8] sm:$0xf0]  ;;  %v2286_v7 = vor.u32 %v3191_v58, %v2283_v60  ;;  %v2466_v15 = vor.u32 %v3238_v63, %v2465_v62 }
  0x42   :  { %786 = vmatpush.bf16.msrb.mxu2 %v2254_v13  ;;  %v3189_v8 = vld [vmem:[#allocation6 + $0x84] sm:$0xf]  ;;  %v2275_v9 = vld [vmem:[#allocation6 + $0x88] sm:$0xf0]  ;;  %v3219_v11 = vld [vmem:[#allocation6 + $0x174] sm:$0xf]  ;;  %v2530_v20 = vor.u32 %v3254_v3, %v2529_v0  ;;  %v2214_v21 = vor.u32 %v3173_v4, %v2211_v6 }
  0x43   :  { %800 = vmatpush.bf16.msrb.mxu3 %v2318_v18  ;;  %v2395_v12 = vld [vmem:[#allocation6 + $0x178] sm:$0xf0]  ;;  %v3235_v13 = vld [vmem:[#allocation6 + $0x1f4] sm:$0xf]  ;;  %v2201_v23 = vld [vmem:[#allocation3 + $0x10] sm:$0xf] }
  0x44   :  { %759 = vmatpush.bf16.msrb.mxu0 %v2498_v24  ;;  %v2459_v14 = vld [vmem:[#allocation6 + $0x1f8] sm:$0xf0]  ;;  %v3251_v16 = vld [vmem:[#allocation6 + $0x274] sm:$0xf]  ;;  %v3172_v24 = vld [vmem:[#allocation3 + $0x24] sm:$0xf0] }
  0x45   :  { %773 = vmatpush.bf16.msrb.mxu1 %v2562_v25  ;;  %v2523_v18 = vld [vmem:[#allocation6 + $0x278] sm:$0xf0]  ;;  %v3267_v19 = vld [vmem:[#allocation6 + $0x2f4] sm:$0xf]  ;;  %v2278_v25 = vor.u32 %v3189_v8, %v2275_v9  ;;  %v3169_v27 = vld [vmem:[#allocation3 + $0x14] sm:$0xf]  ;;  %v2462_v29 = vor.u32 %v3235_v13, %v2459_v14  ;;  %v3626_v35 = vor.u32 %v3172_v24, %v2201_v23 }
  0x46   :  { %787 = vmatpush.bf16.msrb.mxu2 %v2246_v26  ;;  %v2587_v22 = vld [vmem:[#allocation6 + $0x2f8] sm:$0xf0]  ;;  %v2398_v26 = vor.u32 %v3219_v11, %v2395_v12  ;;  %v3217_v31 = vld [vmem:[#allocation6 + $0x164] sm:$0xf]  ;;  %v2387_v32 = vld [vmem:[#allocation6 + $0x168] sm:$0xf0] }
  0x47   :  { %801 = vmatpush.bf16.msrb.mxu3 %v2310_v30  ;;  %v2203_v28 = vld [vmem:[#allocation3 + $0x28] sm:$0xf0]  ;;  %v2526_v30 = vor.u32 %v3251_v16, %v2523_v18  ;;  %v3233_v33 = vld [vmem:[#allocation6 + $0x1e4] sm:$0xf]  ;;  %v2590_v34 = vor.u32 %v3267_v19, %v2587_v22  ;;  %v2579_v41 = vld [vmem:[#allocation6 + $0x2e8] sm:$0xf0] }
  0x48   :  { %760 = vmatpush.bf16.msrb.mxu0 %v2490_v36  ;;  %v2451_v36 = vld [vmem:[#allocation6 + $0x1e8] sm:$0xf0]  ;;  %v3628_v39 = vor.u32 %v3169_v27, %v2203_v28  ;;  %v3265_v40 = vld [vmem:[#allocation6 + $0x2e4] sm:$0xf]  ;;  %v3215_v45 = vld [vmem:[#allocation6 + $0x154] sm:$0xf] }
  0x49   :  { %774 = vmatpush.bf16.msrb.mxu1 %v2554_v37  ;;  %v3249_v37 = vld [vmem:[#allocation6 + $0x264] sm:$0xf]  ;;  %v2454_v43 = vor.u32 %v3233_v33, %v2451_v36  ;;  %v2379_v46 = vld [vmem:[#allocation6 + $0x158] sm:$0xf0]  ;;  %v3231_v47 = vld [vmem:[#allocation6 + $0x1d4] sm:$0xf] }
  0x4a   :  { %788 = vmatpush.bf16.msrb.mxu2 %v2238_v38  ;;  %v2515_v38 = vld [vmem:[#allocation6 + $0x268] sm:$0xf0]  ;;  %v2507_v51 = vld [vmem:[#allocation6 + $0x258] sm:$0xf0]  ;;  %v3263_v52 = vld [vmem:[#allocation6 + $0x2d4] sm:$0xf] }
  0x4b   :  { %802 = vmatpush.bf16.msrb.mxu3 %v2302_v42  ;;  %v2390_v42 = vor.u32 %v3217_v31, %v2387_v32  ;;  %v2518_v44 = vor.u32 %v3249_v37, %v2515_v38  ;;  %v2571_v53 = vld [vmem:[#allocation6 + $0x2d8] sm:$0xf0]  ;;  %v3213_v57 = vld [vmem:[#allocation6 + $0x144] sm:$0xf]  ;;  %v2371_v58 = vld [vmem:[#allocation6 + $0x148] sm:$0xf0] }
  0x4c   :  { %761 = vmatpush.bf16.msrb.mxu0 %v2482_v48  ;;  %v2582_v48 = vor.u32 %v3265_v40, %v2579_v41  ;;  %v3229_v60 = vld [vmem:[#allocation6 + $0x1c4] sm:$0xf]  ;;  %v2435_v62 = vld [vmem:[#allocation6 + $0x1c8] sm:$0xf0]  ;;  %v3211_v3 = vld [vmem:[#allocation6 + $0x134] sm:$0xf] }
  0x4d   :  { %775 = vmatpush.bf16.msrb.mxu1 %v2546_v49  ;;  %v2443_v49 = vld [vmem:[#allocation6 + $0x1d8] sm:$0xf0]  ;;  %v3245_v63 = vld [vmem:[#allocation6 + $0x244] sm:$0xf]  ;;  %v2499_v0 = vld [vmem:[#allocation6 + $0x248] sm:$0xf0] }
  0x4e   :  { %789 = vmatpush.bf16.msrb.mxu2 %v2230_v50  ;;  %v3247_v50 = vld [vmem:[#allocation6 + $0x254] sm:$0xf]  ;;  %v2446_v55 = vor.u32 %v3231_v47, %v2443_v49  ;;  %v2502_v4 = vor.u32 %v3245_v63, %v2499_v0  ;;  %v2363_v6 = vld [vmem:[#allocation6 + $0x138] sm:$0xf0]  ;;  %v3209_v19 = vld [vmem:[#allocation6 + $0x124] sm:$0xf] }
  0x4f   :  { %803 = vmatpush.bf16.msrb.mxu3 %v2294_v54  ;;  %v2382_v54 = vor.u32 %v3215_v45, %v2379_v46  ;;  %v2510_v56 = vor.u32 %v3247_v50, %v2507_v51  ;;  %v2427_v9 = vld [vmem:[#allocation6 + $0x1b8] sm:$0xf0]  ;;  %v3243_v11 = vld [vmem:[#allocation6 + $0x234] sm:$0xf]  ;;  %v2419_v23 = vld [vmem:[#allocation6 + $0x1a8] sm:$0xf0] }
  0x50   :  { %762 = vmatpush.bf16.msrb.mxu0 %v2474_v61  ;;  %v2574_v61 = vor.u32 %v3263_v52, %v2571_v53  ;;  %v2491_v12 = vld [vmem:[#allocation6 + $0x238] sm:$0xf0]  ;;  %v3259_v13 = vld [vmem:[#allocation6 + $0x2b4] sm:$0xf]  ;;  %v3241_v24 = vld [vmem:[#allocation6 + $0x224] sm:$0xf] }
  0x51   :  { %776 = vmatpush.bf16.msrb.mxu1 %v2538_v1  ;;  %v3261_v1 = vld [vmem:[#allocation6 + $0x2c4] sm:$0xf]  ;;  %v2555_v14 = vld [vmem:[#allocation6 + $0x2b8] sm:$0xf0]  ;;  %v2494_v18 = vor.u32 %v3243_v11, %v2491_v12  ;;  %v2547_v27 = vld [vmem:[#allocation6 + $0x2a8] sm:$0xf0] }
  0x52   :  { %790 = vmatpush.bf16.msrb.mxu2 %v2222_v2  ;;  %v2374_v2 = vor.u32 %v3213_v57, %v2371_v58  ;;  %v2558_v22 = vor.u32 %v3259_v13, %v2555_v14  ;;  %v3207_v31 = vld [vmem:[#allocation6 + $0x114] sm:$0xf]  ;;  %v2347_v32 = vld [vmem:[#allocation6 + $0x118] sm:$0xf0]  ;;  %v2339_v46 = vld [vmem:[#allocation6 + $0x108] sm:$0xf0] }
  0x53   :  { %804 = vmatpush.bf16.msrb.mxu3 %v2286_v7  ;;  %v3227_v7 = vld [vmem:[#allocation6 + $0x1b4] sm:$0xf]  ;;  %v2411_v36 = vld [vmem:[#allocation6 + $0x198] sm:$0xf0]  ;;  %v3221_v47 = vld [vmem:[#allocation6 + $0x184] sm:$0xf] }
  0x54   :  { %763 = vmatpush.bf16.msrb.mxu0 %v2466_v15  ;;  %v2366_v15 = vor.u32 %v3211_v3, %v2363_v6  ;;  %v2430_v16 = vor.u32 %v3227_v7, %v2427_v9  ;;  %v3223_v33 = vld [vmem:[#allocation6 + $0x194] sm:$0xf]  ;;  %v2475_v38 = vld [vmem:[#allocation6 + $0x218] sm:$0xf0]  ;;  %v3237_v50 = vld [vmem:[#allocation6 + $0x204] sm:$0xf] }
  0x55   :  { %777 = vmatpush.bf16.msrb.mxu1 %v2530_v20  ;;  %v2355_v20 = vld [vmem:[#allocation6 + $0x128] sm:$0xf0]  ;;  %v3239_v37 = vld [vmem:[#allocation6 + $0x214] sm:$0xf]  ;;  %v2539_v41 = vld [vmem:[#allocation6 + $0x298] sm:$0xf0] }
  0x56   :  { %791 = vmatpush.bf16.msrb.mxu2 %v2214_v21  ;;  %v3225_v21 = vld [vmem:[#allocation6 + $0x1a4] sm:$0xf]  ;;  %v2358_v28 = vor.u32 %v3209_v19, %v2355_v20  ;;  %v3255_v40 = vld [vmem:[#allocation6 + $0x294] sm:$0xf]  ;;  %v2478_v45 = vor.u32 %v3239_v37, %v2475_v38  ;;  %v2467_v51 = vld [vmem:[#allocation6 + $0x208] sm:$0xf0] }
  0x57   :  { %805 = vmatpush.bf16.msrb.mxu3 %v2278_v25  ;;  %764 = vmatmul.bf16.vlgmr.msrb.gmra.mxu0 %v3626_v35  ;;  %v2483_v25 = vld [vmem:[#allocation6 + $0x228] sm:$0xf0]  ;;  %v2542_v49 = vor.u32 %v3255_v40, %v2539_v41  ;;  %v3253_v52 = vld [vmem:[#allocation6 + $0x284] sm:$0xf]  ;;  %v3311_v57 = vld [vmem:[#allocation8 + $0x154] sm:$0xf] }
  0x58   :  { %812 = vmatpush.bf16.msra.mxu0 %v2398_v26  ;;  %778 = vmatmul.bf16.vlgmr.msrb.gmra.mxu1 %v3628_v39  ;;  %v3257_v26 = vld [vmem:[#allocation6 + $0x2a4] sm:$0xf]  ;;  %v2531_v53 = vld [vmem:[#allocation6 + $0x288] sm:$0xf0]  ;;  %v2739_v3 = vld [vmem:[#allocation8 + $0x138] sm:$0xf0] }
  0x59   :  { %826 = vmatpush.bf16.msra.mxu1 %v2462_v29  ;;  %792 = vmatmul.bf16.vlgmr.msrb.gmra.mxu2 %v3614_v59  ;;  %v2563_v59 = vld [vmem:[#allocation6 + $0x2c8] sm:$0xf0]  ;;  %v2422_v29 = vor.u32 %v3225_v21, %v2419_v23  ;;  %v2713_v6 = vld [vmem:[#allocation8 + $0xf0] sm:$0xf]  ;;  %v3302_v7 = vld [vmem:[#allocation8 + $0x104] sm:$0xf0] }
  0x5a   :  { %840 = vmatpush.bf16.msra.mxu2 %v2526_v30  ;;  %806 = vmatmul.bf16.vlgmr.msrb.gmra.mxu3 %v3617_v5  ;;  %v2438_v5 = vor.u32 %v3229_v60, %v2435_v62  ;;  %v2566_v8 = vor.u32 %v3261_v1, %v2563_v59  ;;  %v2486_v30 = vor.u32 %v3241_v24, %v2483_v25  ;;  %v2763_v58 = vld [vmem:[#allocation8 + $0x168] sm:$0xf0]  ;;  %v2737_v1 = vld [vmem:[#allocation8 + $0x120] sm:$0xf]  ;;  %v3308_v59 = vld [vmem:[#allocation8 + $0x134] sm:$0xf0] }
  0x5b   :  { %854 = vmatpush.bf16.msra.mxu3 %v2590_v34  ;;  %v2550_v34 = vor.u32 %v3257_v26, %v2547_v27  ;;  %v2534_v62 = vor.u32 %v3253_v52, %v2531_v53  ;;  %v2766_v0 = vor.u32 %v3311_v57, %v2763_v58  ;;  %v2715_v9 = vld [vmem:[#allocation8 + $0x108] sm:$0xf0]  ;;  %v2714_v11 = vor.u32 %v3302_v7, %v2713_v6  ;;  %v2689_v13 = vld [vmem:[#allocation8 + $0xc0] sm:$0xf]  ;;  %v3296_v14 = vld [vmem:[#allocation8 + $0xd4] sm:$0xf0] }
  0x5c   :  { %813 = vmatpush.bf16.msra.mxu0 %v2390_v42  ;;  %v2350_v42 = vor.u32 %v3207_v31, %v2347_v32  ;;  %v2665_v19 = vld [vmem:[#allocation8 + $0x90] sm:$0xf]  ;;  %v3287_v20 = vld [vmem:[#allocation8 + $0x94] sm:$0xf]  ;;  %v3284_v23 = vld [vmem:[#allocation8 + $0x74] sm:$0xf0] }
  0x5d   :  { %827 = vmatpush.bf16.msra.mxu1 %v2454_v43  ;;  %v3205_v43 = vld [vmem:[#allocation6 + $0x104] sm:$0xf]  ;;  %v2643_v25 = vld [vmem:[#allocation8 + $0x78] sm:$0xf0]  ;;  %v2619_v32 = vld [vmem:[#allocation8 + $0x48] sm:$0xf0] }
  0x5e   :  { %841 = vmatpush.bf16.msra.mxu2 %v2518_v44  ;;  %v2414_v44 = vor.u32 %v3223_v33, %v2411_v36  ;;  %v3281_v24 = vld [vmem:[#allocation8 + $0x64] sm:$0xf]  ;;  %v3272_v36 = vld [vmem:[#allocation8 + $0x14] sm:$0xf0]  ;;  %v2595_v40 = vld [vmem:[#allocation8 + $0x18] sm:$0xf0] }
  0x5f   :  { %855 = vmatpush.bf16.msra.mxu3 %v2582_v48  ;;  %v2403_v48 = vld [vmem:[#allocation6 + $0x188] sm:$0xf0]  ;;  %v2646_v27 = vor.u32 %v3281_v24, %v2643_v25  ;;  %v3269_v37 = vld [vmem:[#allocation8 + $0x4] sm:$0xf]  ;;  %v2769_v41 = vld [vmem:[#allocation8 + $0x158] sm:$0xf] }
  0x60   :  { %814 = vmatpush.bf16.msra.mxu0 %v2382_v54  ;;  %v2761_v54 = vld [vmem:[#allocation8 + $0x150] sm:$0xf]  ;;  %v2406_v60 = vor.u32 %v3221_v47, %v2403_v48  ;;  %v2745_v48 = vld [vmem:[#allocation8 + $0x128] sm:$0xf]  ;;  %v2747_v52 = vld [vmem:[#allocation8 + $0x140] sm:$0xf0] }
  0x61   :  { %828 = vmatpush.bf16.msra.mxu1 %v2446_v55  ;;  %v3314_v55 = vld [vmem:[#allocation8 + $0x164] sm:$0xf0]  ;;  %v2955_v58 = vld [vmem:[#allocation8 + $0x2e8] sm:$0xf0]  ;;  %v3344_v24 = vld [vmem:[#allocation8 + $0x254] sm:$0xf0] }
  0x62   :  { %842 = vmatpush.bf16.msra.mxu2 %v2510_v56  ;;  %v2342_v56 = vor.u32 %v3205_v43, %v2339_v46  ;;  %v2762_v63 = vor.u32 %v3314_v55, %v2761_v54  ;;  %v2598_v43 = vor.u32 %v3269_v37, %v2595_v40  ;;  %v2771_v46 = vld [vmem:[#allocation8 + $0x170] sm:$0xf0]  ;;  %v2953_v54 = vld [vmem:[#allocation8 + $0x2d0] sm:$0xf]  ;;  %v3362_v55 = vld [vmem:[#allocation8 + $0x2e4] sm:$0xf0] }
  0x63   :  { %856 = vmatpush.bf16.msra.mxu3 %v2574_v61  ;;  %v2470_v61 = vor.u32 %v3237_v50, %v2467_v51  ;;  %v3306_v50 = vld [vmem:[#allocation8 + $0x12c] sm:$0xf]  ;;  %v2954_v57 = vor.u32 %v3362_v55, %v2953_v54  ;;  %v2857_v37 = vld [vmem:[#allocation8 + $0x210] sm:$0xf]  ;;  %v3335_v40 = vld [vmem:[#allocation8 + $0x214] sm:$0xf] }
  0x64   :  { %815 = vmatpush.bf16.msra.mxu0 %v2374_v2  ;;  %v3305_v2 = vld [vmem:[#allocation8 + $0x124] sm:$0xf]  ;;  %v2750_v53 = vor.u32 %v3306_v50, %v2747_v52  ;;  %v2627_v50 = vld [vmem:[#allocation8 + $0x50] sm:$0xf0]  ;;  %v2833_v52 = vld [vmem:[#allocation8 + $0x1e0] sm:$0xf] }
  0x65   :  { %829 = vmatpush.bf16.msra.mxu1 %v2438_v5  ;;  %v2738_v5 = vor.u32 %v3308_v59, %v2737_v1  ;;  %v2723_v1 = vld [vmem:[#allocation8 + $0x110] sm:$0xf0]  ;;  %v2929_v59 = vld [vmem:[#allocation8 + $0x2a0] sm:$0xf]  ;;  %v3329_v54 = vld [vmem:[#allocation8 + $0x1e4] sm:$0xf] }
  0x66   :  { %843 = vmatpush.bf16.msra.mxu2 %v2502_v4  ;;  %v2742_v4 = vor.u32 %v3305_v2, %v2739_v3  ;;  %v3356_v3 = vld [vmem:[#allocation8 + $0x2b4] sm:$0xf0]  ;;  %s2168_s25 = sshll.u32 %s3682_s6, 4  ;;  %s2169_s25 = int_to_ptr.hbm [resolvable:$true] %s2168_s25 }
  0x67   :  { %857 = vmatpush.bf16.msra.mxu3 %v2566_v8  ;;  %v3299_v8 = vld [vmem:[#allocation8 + $0xf4] sm:$0xf]  ;;  %v2930_v6 = vor.u32 %v3356_v3, %v2929_v59  ;;  %v3326_v59 = vld [vmem:[#allocation8 + $0x1c4] sm:$0xf0]  ;;  %v2811_v3 = vld [vmem:[#allocation8 + $0x1c8] sm:$0xf0] }
  0x68   :  { %816 = vmatpush.bf16.msra.mxu0 %v2366_v15  ;;  %v2718_v12 = vor.u32 %v3299_v8, %v2715_v9  ;;  %v3293_v15 = vld [vmem:[#allocation8 + $0xc4] sm:$0xf]  ;;  %v2697_v8 = vld [vmem:[#allocation8 + $0xc8] sm:$0xf]  ;;  %v3297_v9 = vld [vmem:[#allocation8 + $0xdc] sm:$0xf0] }
  0x69   :  { %830 = vmatpush.bf16.msra.mxu1 %v2430_v16  ;;  %v2690_v16 = vor.u32 %v3296_v14, %v2689_v13  ;;  %v2699_v13 = vld [vmem:[#allocation8 + $0xe0] sm:$0xf0] }
  0x6a   :  { %844 = vmatpush.bf16.msra.mxu2 %v2494_v18 }
  0x6b   :  { %858 = vmatpush.bf16.msra.mxu3 %v2558_v22  ;;  %v2641_v22 = vld [vmem:[#allocation8 + $0x60] sm:$0xf] }
  0x6c   :  { %817 = vmatpush.bf16.msra.mxu0 %v2358_v28  ;;  %v2642_v26 = vor.u32 %v3284_v23, %v2641_v22  ;;  %v2617_v28 = vld [vmem:[#allocation8 + $0x30] sm:$0xf]  ;;  %v2675_v22 = vld [vmem:[#allocation8 + $0xb0] sm:$0xf0]  ;;  %v2881_v23 = vld [vmem:[#allocation8 + $0x240] sm:$0xf] }
  0x6d   :  { %831 = vmatpush.bf16.msra.mxu1 %v2422_v29  ;;  %v3278_v29 = vld [vmem:[#allocation8 + $0x44] sm:$0xf0] }
  0x6e   :  { %845 = vmatpush.bf16.msra.mxu2 %v2486_v30  ;;  %v3275_v30 = vld [vmem:[#allocation8 + $0x34] sm:$0xf]  ;;  %v2618_v31 = vor.u32 %v3278_v29, %v2617_v28  ;;  %v2883_v28 = vld [vmem:[#allocation8 + $0x258] sm:$0xf0] }
  0x6f   :  { %859 = vmatpush.bf16.msra.mxu3 %v2550_v34  ;;  %v2622_v33 = vor.u32 %v3275_v30, %v2619_v32  ;;  %v2593_v34 = vld [vmem:[#allocation8] sm:$0xf]  ;;  %v2649_v30 = vld [vmem:[#allocation8 + $0x68] sm:$0xf]  ;;  %v3282_v32 = vld [vmem:[#allocation8 + $0x6c] sm:$0xf] }
  0x70   :  { %818 = vmatpush.bf16.msra.mxu0 %v2350_v42  ;;  %v2594_v38 = vor.u32 %v3272_v36, %v2593_v34  ;;  %v3315_v42 = vld [vmem:[#allocation8 + $0x16c] sm:$0xf0]  ;;  %v2651_v34 = vld [vmem:[#allocation8 + $0x80] sm:$0xf0] }
  0x71   :  { %832 = vmatpush.bf16.msra.mxu1 %v2414_v44  ;;  %v2770_v44 = vor.u32 %v3315_v42, %v2769_v41  ;;  %v2654_v36 = vor.u32 %v3282_v32, %v2651_v34  ;;  %v2859_v42 = vld [vmem:[#allocation8 + $0x228] sm:$0xf0] }
  0x72   :  { %846 = vmatpush.bf16.msra.mxu2 %v2478_v45  ;;  %v3312_v45 = vld [vmem:[#allocation8 + $0x15c] sm:$0xf] }
  0x73   :  { %860 = vmatpush.bf16.msra.mxu3 %v2542_v49  ;;  %v2774_v47 = vor.u32 %v3312_v45, %v2771_v46  ;;  %v3309_v49 = vld [vmem:[#allocation8 + $0x13c] sm:$0xf0]  ;;  %v2625_v45 = vld [vmem:[#allocation8 + $0x38] sm:$0xf]  ;;  %v3279_v46 = vld [vmem:[#allocation8 + $0x4c] sm:$0xf0] }
  0x74   :  { %819 = vmatpush.bf16.msra.mxu0 %v2342_v56  ;;  %v2746_v51 = vor.u32 %v3309_v49, %v2745_v48  ;;  %v3359_v56 = vld [vmem:[#allocation8 + $0x2d4] sm:$0xf]  ;;  %v2626_v49 = vor.u32 %v3279_v46, %v2625_v45 }
  0x75   :  { %833 = vmatpush.bf16.msra.mxu1 %v2406_v60  ;;  %v2721_v60 = vld [vmem:[#allocation8 + $0xf8] sm:$0xf] }
  0x76   :  { %847 = vmatpush.bf16.msra.mxu2 %v2470_v61  ;;  %v3303_v61 = vld [vmem:[#allocation8 + $0x10c] sm:$0xf0] }
  0x77   :  { %861 = vmatpush.bf16.msra.mxu3 %v2534_v62  ;;  %820 = vmatmul.bf16.vlgmr.msra.gmra.mxu0 %v3619_v10  ;;  %v2691_v10 = vld [vmem:[#allocation8 + $0xd8] sm:$0xf0]  ;;  %v2958_v62 = vor.u32 %v3359_v56, %v2955_v58  ;;  %v2601_v58 = vld [vmem:[#allocation8 + $0x8] sm:$0xf] }
  0x78   :  { %1450 = vmatpush.bf16.msrb.mxu0 %v2762_v63  ;;  %834 = vmatmul.bf16.vlgmr.msra.gmra.mxu1 %v3621_v17  ;;  %v2694_v18 = vor.u32 %v3293_v15, %v2691_v10  ;;  %v3290_v17 = vld [vmem:[#allocation8 + $0xa4] sm:$0xf0]  ;;  %v2722_v63 = vor.u32 %v3303_v61, %v2721_v60  ;;  %v2905_v15 = vld [vmem:[#allocation8 + $0x270] sm:$0xf]  ;;  %v2835_v56 = vld [vmem:[#allocation8 + $0x1f8] sm:$0xf0] }
  0x79   :  { %848 = vmatmul.bf16.vlgmr.msra.gmra.mxu2 %v3626_v35  ;;  %v2667_v35 = vld [vmem:[#allocation8 + $0xa8] sm:$0xf0]  ;;  %v2666_v21 = vor.u32 %v3290_v17, %v2665_v19  ;;  %1464 = vmatpush.bf16.msrb.mxu1 %v2954_v57  ;;  %v3350_v10 = vld [vmem:[#allocation8 + $0x284] sm:$0xf0]  ;;  %v2838_v57 = vor.u32 %v3329_v54, %v2835_v56  ;;  %v3273_v60 = vld [vmem:[#allocation8 + $0x1c] sm:$0xf0] }
  0x7a   :  { %1478 = vmatpush.bf16.msrb.mxu2 %v2766_v0  ;;  %862 = vmatmul.bf16.vlgmr.msra.gmra.mxu3 %v3628_v39  ;;  %v2670_v39 = vor.u32 %v3287_v20, %v2667_v35  ;;  %v3300_v0 = vld [vmem:[#allocation8 + $0xfc] sm:$0xf]  ;;  %v2907_v19 = vld [vmem:[#allocation8 + $0x288] sm:$0xf0]  ;;  %v2673_v20 = vld [vmem:[#allocation8 + $0x98] sm:$0xf] }
  0x7b   :  { %v2726_v2 = vor.u32 %v3300_v0, %v2723_v1  ;;  %1492 = vmatpush.bf16.msrb.mxu3 %v2958_v62  ;;  %v3291_v35 = vld [vmem:[#allocation8 + $0xac] sm:$0xf0]  ;;  %v3270_v61 = vld [vmem:[#allocation8 + $0xc] sm:$0xf]  ;;  %v2602_v62 = vor.u32 %v3273_v60, %v2601_v58  ;;  %v2867_v56 = vld [vmem:[#allocation8 + $0x230] sm:$0xf0] }
  0x7c   :  { %1451 = vmatpush.bf16.msrb.mxu0 %v2738_v5  ;;  %v3353_v5 = vld [vmem:[#allocation8 + $0x2a4] sm:$0xf]  ;;  %v2809_v1 = vld [vmem:[#allocation8 + $0x1b0] sm:$0xf] }
  0x7d   :  { %1465 = vmatpush.bf16.msrb.mxu1 %v2930_v6 }
  0x7e   :  { %1479 = vmatpush.bf16.msrb.mxu2 %v2742_v4  ;;  %v2931_v4 = vld [vmem:[#allocation8 + $0x2b8] sm:$0xf0] }
  0x7f   :  { %v2934_v7 = vor.u32 %v3353_v5, %v2931_v4  ;;  %v2810_v5 = vor.u32 %v3326_v59, %v2809_v1  ;;  %v2779_v1 = vld [vmem:[#allocation8 + $0x178] sm:$0xf0] }
  0x80   :  { %1452 = vmatpush.bf16.msrb.mxu0 %v2714_v11  ;;  %v3294_v11 = vld [vmem:[#allocation8 + $0xcc] sm:$0xf] }
  0x81   :  { %1493 = vmatpush.bf16.msrb.mxu3 %v2934_v7  ;;  %v2702_v14 = vor.u32 %v3294_v11, %v2699_v13  ;;  %v3317_v11 = vld [vmem:[#allocation8 + $0x184] sm:$0xf] }
  0x82   :  { %1480 = vmatpush.bf16.msrb.mxu2 %v2718_v12  ;;  %v2698_v12 = vor.u32 %v3297_v9, %v2697_v8  ;;  %v2785_v8 = vld [vmem:[#allocation8 + $0x180] sm:$0xf]  ;;  %v3320_v9 = vld [vmem:[#allocation8 + $0x194] sm:$0xf0] }
  0x83   :  { %v2786_v13 = vor.u32 %v3320_v9, %v2785_v8  ;;  %v2753_v9 = vld [vmem:[#allocation8 + $0x130] sm:$0xf] }
  0x84   :  { %1453 = vmatpush.bf16.msrb.mxu0 %v2690_v16  ;;  %v3347_v16 = vld [vmem:[#allocation8 + $0x274] sm:$0xf] }
  0x85   :  { %v2910_v17 = vor.u32 %v3347_v16, %v2907_v19  ;;  %v3360_v19 = vld [vmem:[#allocation8 + $0x2dc] sm:$0xf] }
  0x86   :  { %1481 = vmatpush.bf16.msrb.mxu2 %v2694_v18  ;;  %v2906_v18 = vor.u32 %v3350_v10, %v2905_v15  ;;  %v2961_v15 = vld [vmem:[#allocation8 + $0x2d8] sm:$0xf]  ;;  %v3363_v10 = vld [vmem:[#allocation8 + $0x2ec] sm:$0xf0] }
  0x87   :  { %1494 = vmatpush.bf16.msrb.mxu3 %v2910_v17  ;;  %v2963_v17 = vld [vmem:[#allocation8 + $0x2f0] sm:$0xf0] }
  0x88   :  { %1454 = vmatpush.bf16.msrb.mxu0 %v2666_v21  ;;  %v3288_v21 = vld [vmem:[#allocation8 + $0x9c] sm:$0xf]  ;;  %1466 = vmatpush.bf16.msrb.mxu1 %v2906_v18  ;;  %v2962_v18 = vor.u32 %v3363_v10, %v2961_v15  ;;  %v3307_v15 = vld [vmem:[#allocation8 + $0x134] sm:$0xf]  ;;  %v2755_v10 = vld [vmem:[#allocation8 + $0x148] sm:$0xf0] }
  0x89   :  { %v2678_v25 = vor.u32 %v3288_v21, %v2675_v22  ;;  %v3357_v22 = vld [vmem:[#allocation8 + $0x2bc] sm:$0xf0] }
  0x8a   :  { %1482 = vmatpush.bf16.msrb.mxu2 %v2670_v39  ;;  %v2674_v39 = vor.u32 %v3291_v35, %v2673_v20  ;;  %v2966_v35 = vor.u32 %v3360_v19, %v2963_v17  ;;  %v3327_v19 = vld [vmem:[#allocation8 + $0x1cc] sm:$0xf0]  ;;  %v3324_v17 = vld [vmem:[#allocation8 + $0x1bc] sm:$0xf] }
  0x8c   :  { %1455 = vmatpush.bf16.msrb.mxu0 %v2642_v26  ;;  %v2882_v26 = vor.u32 %v3344_v24, %v2881_v23  ;;  %v3354_v23 = vld [vmem:[#allocation8 + $0x2ac] sm:$0xf] }
  0x8e   :  { %1483 = vmatpush.bf16.msrb.mxu2 %v2646_v27  ;;  %v3341_v27 = vld [vmem:[#allocation8 + $0x244] sm:$0xf]  ;;  %1467 = vmatpush.bf16.msrb.mxu1 %v2882_v26 }
  0x8f   :  { %v2886_v29 = vor.u32 %v3341_v27, %v2883_v28 }
  0x90   :  { %1456 = vmatpush.bf16.msrb.mxu0 %v2618_v31  ;;  %v3285_v31 = vld [vmem:[#allocation8 + $0x7c] sm:$0xf0] }
  0x91   :  { %1495 = vmatpush.bf16.msrb.mxu3 %v2886_v29  ;;  %v2913_v29 = vld [vmem:[#allocation8 + $0x278] sm:$0xf] }
  0x92   :  { %1484 = vmatpush.bf16.msrb.mxu2 %v2622_v33  ;;  %v2650_v33 = vor.u32 %v3285_v31, %v2649_v30  ;;  %v3351_v30 = vld [vmem:[#allocation8 + $0x28c] sm:$0xf0]  ;;  %v3348_v31 = vld [vmem:[#allocation8 + $0x27c] sm:$0xf] }
  0x93   :  { %v2914_v34 = vor.u32 %v3351_v30, %v2913_v29  ;;  %v2793_v29 = vld [vmem:[#allocation8 + $0x188] sm:$0xf]  ;;  %v3321_v30 = vld [vmem:[#allocation8 + $0x19c] sm:$0xf0] }
  0x94   :  { %1457 = vmatpush.bf16.msrb.mxu0 %v2594_v38  ;;  %v3338_v38 = vld [vmem:[#allocation8 + $0x224] sm:$0xf0] }
  0x95   :  { %v2858_v41 = vor.u32 %v3338_v38, %v2857_v37 }
  0x96   :  { %1485 = vmatpush.bf16.msrb.mxu2 %v2598_v43 }
  0x97   :  { %1468 = vmatpush.bf16.msrb.mxu1 %v2858_v41 }
  0x98   :  { %1506 = vmatpush.bf16.msra.mxu0 %v2770_v44  ;;  %v2862_v44 = vor.u32 %v3335_v40, %v2859_v42  ;;  %v2889_v42 = vld [vmem:[#allocation8 + $0x248] sm:$0xf] }
  0x9a   :  { %1534 = vmatpush.bf16.msra.mxu2 %v2774_v47  ;;  %v3276_v47 = vld [vmem:[#allocation8 + $0x3c] sm:$0xf]  ;;  %1496 = vmatpush.bf16.msrb.mxu3 %v2862_v44  ;;  %v3342_v44 = vld [vmem:[#allocation8 + $0x24c] sm:$0xf] }
  0x9c   :  { %1507 = vmatpush.bf16.msra.mxu0 %v2746_v51  ;;  %v2630_v51 = vor.u32 %v3276_v47, %v2627_v50  ;;  %v2891_v47 = vld [vmem:[#allocation8 + $0x260] sm:$0xf0] }
  0x9e   :  { %1535 = vmatpush.bf16.msra.mxu2 %v2750_v53  ;;  %v3332_v53 = vld [vmem:[#allocation8 + $0x1f4] sm:$0xf0]  ;;  %1497 = vmatpush.bf16.msrb.mxu3 %v2838_v57 }
  0x9f   :  { %v2834_v55 = vor.u32 %v3332_v53, %v2833_v52  ;;  %v3339_v52 = vld [vmem:[#allocation8 + $0x22c] sm:$0xf0]  ;;  %v3336_v53 = vld [vmem:[#allocation8 + $0x21c] sm:$0xf] }
  0xa0   :  { %1508 = vmatpush.bf16.msra.mxu0 %v2722_v63  ;;  %v2603_v63 = vld [vmem:[#allocation8 + $0x20] sm:$0xf0] }
  0xa1   :  { %1469 = vmatpush.bf16.msrb.mxu1 %v2834_v55  ;;  %v2606_v0 = vor.u32 %v3270_v61, %v2603_v63  ;;  %v2777_v61 = vld [vmem:[#allocation8 + $0x160] sm:$0xf]  ;;  %v3316_v63 = vld [vmem:[#allocation8 + $0x174] sm:$0xf0] }
  0xa2   :  { %1536 = vmatpush.bf16.msra.mxu2 %v2726_v2  ;;  %v3323_v2 = vld [vmem:[#allocation8 + $0x1b4] sm:$0xf] }
  0xa3   :  { %v2814_v4 = vor.u32 %v3323_v2, %v2811_v3  ;;  %v2841_v2 = vld [vmem:[#allocation8 + $0x1e8] sm:$0xf]  ;;  %v3333_v3 = vld [vmem:[#allocation8 + $0x1fc] sm:$0xf0] }
  0xa4   :  { %1509 = vmatpush.bf16.msra.mxu0 %v2698_v12 }
  0xa5   :  { %1470 = vmatpush.bf16.msrb.mxu1 %v2810_v5  ;;  %1498 = vmatpush.bf16.msrb.mxu3 %v2814_v4  ;;  %v3330_v5 = vld [vmem:[#allocation8 + $0x1ec] sm:$0xf]  ;;  %v2842_v4 = vor.u32 %v3333_v3, %v2841_v2  ;;  %v2635_v2 = vld [vmem:[#allocation8 + $0x58] sm:$0xf0] }
  0xa6   :  { %1537 = vmatpush.bf16.msra.mxu2 %v2702_v14  ;;  %v2787_v14 = vld [vmem:[#allocation8 + $0x198] sm:$0xf0] }
  0xa7   :  { %v2790_v16 = vor.u32 %v3317_v11, %v2787_v14  ;;  %v3310_v14 = vld [vmem:[#allocation8 + $0x144] sm:$0xf0] }
  0xa8   :  { %1510 = vmatpush.bf16.msra.mxu0 %v2674_v39  ;;  %v2937_v39 = vld [vmem:[#allocation8 + $0x2a8] sm:$0xf] }
  0xa9   :  { %1471 = vmatpush.bf16.msrb.mxu1 %v2786_v13  ;;  %1499 = vmatpush.bf16.msrb.mxu3 %v2790_v16  ;;  %v2938_v24 = vor.u32 %v3357_v22, %v2937_v39 }
  0xaa   :  { %1538 = vmatpush.bf16.msra.mxu2 %v2678_v25  ;;  %v2939_v25 = vld [vmem:[#allocation8 + $0x2c0] sm:$0xf0] }
  0xab   :  { %v2942_v26 = vor.u32 %v3354_v23, %v2939_v25  ;;  %v2754_v23 = vor.u32 %v3310_v14, %v2753_v9  ;;  %v3304_v25 = vld [vmem:[#allocation8 + $0x114] sm:$0xf0]  ;;  %v2609_v9 = vld [vmem:[#allocation8 + $0x10] sm:$0xf]  ;;  %v3271_v14 = vld [vmem:[#allocation8 + $0x14] sm:$0xf] }
  0xac   :  { %1511 = vmatpush.bf16.msra.mxu0 %v2650_v33 }
  0xad   :  { %1520 = vmatpush.bf16.msra.mxu1 %v2962_v18  ;;  %1548 = vmatpush.bf16.msra.mxu3 %v2966_v35  ;;  %v2817_v18 = vld [vmem:[#allocation8 + $0x1b8] sm:$0xf]  ;;  %v2819_v35 = vld [vmem:[#allocation8 + $0x1d0] sm:$0xf0] }
  0xae   :  { %1539 = vmatpush.bf16.msra.mxu2 %v2654_v36  ;;  %v2915_v36 = vld [vmem:[#allocation8 + $0x290] sm:$0xf0]  ;;  %v2822_v39 = vor.u32 %v3324_v17, %v2819_v35 }
  0xaf   :  { %v2918_v40 = vor.u32 %v3348_v31, %v2915_v36  ;;  %v3318_v31 = vld [vmem:[#allocation8 + $0x18c] sm:$0xf] }
  0xb0   :  { %1512 = vmatpush.bf16.msra.mxu0 %v2626_v49  ;;  %v2894_v49 = vor.u32 %v3342_v44, %v2891_v47  ;;  %v3289_v47 = vld [vmem:[#allocation8 + $0xa4] sm:$0xf] }
  0xb1   :  { %1521 = vmatpush.bf16.msra.mxu1 %v2938_v24  ;;  %1549 = vmatpush.bf16.msra.mxu3 %v2942_v26  ;;  %v2758_v24 = vor.u32 %v3307_v15, %v2755_v10  ;;  %v3301_v26 = vld [vmem:[#allocation8 + $0x104] sm:$0xf]  ;;  %v2611_v15 = vld [vmem:[#allocation8 + $0x28] sm:$0xf0] }
  0xb2   :  { %1540 = vmatpush.bf16.msra.mxu2 %v2630_v51  ;;  %v2865_v51 = vld [vmem:[#allocation8 + $0x218] sm:$0xf]  ;;  %v2614_v17 = vor.u32 %v3271_v14, %v2611_v15  ;;  %v3371_v14 = vld [vmem:[#allocation9 + $0x30] sm:$0xff] }
  0xb3   :  { %v2866_v55 = vor.u32 %v3339_v52, %v2865_v51  ;;  %v3380_v15 = vld [vmem:[#allocation9 + $0x78] sm:$0xff] }
  0xb4   :  { %v709_v43 = vpop.f32.mrf.mxu0  ;;  %1513 = vmatpush.bf16.msra.mxu0 %v2602_v62  ;;  %v2870_v62 = vor.u32 %v3336_v53, %v2867_v56  ;;  %v3283_v56 = vld [vmem:[#allocation8 + $0x74] sm:$0xf] }
  0xb5   :  { %v723_v48 = vpop.f32.mrf.mxu1  ;;  %1522 = vmatpush.bf16.msra.mxu1 %v2914_v34  ;;  %1550 = vmatpush.bf16.msra.mxu3 %v2918_v40  ;;  %v3298_v40 = vld [vmem:[#allocation8 + $0xe4] sm:$0xf0] }
  0xb6   :  { %1541 = vmatpush.bf16.msra.mxu2 %v2606_v0  ;;  %v724_v20 = vadd.f32 %v723_v48, %v709_v43  ;;  %v3345_v43 = vld [vmem:[#allocation8 + $0x25c] sm:$0xf0]  ;;  %v3313_v0 = vld [vmem:[#allocation8 + $0x164] sm:$0xf] }
  0xb7   :  { %v2890_v46 = vor.u32 %v3345_v43, %v2889_v42  ;;  %v2782_v13 = vor.u32 %v3313_v0, %v2779_v1  ;;  %v2707_v42 = vld [vmem:[#allocation8 + $0xe8] sm:$0xf0]  ;;  %v3280_v1 = vld [vmem:[#allocation8 + $0x54] sm:$0xf0] }
  0xb9   :  { %1523 = vmatpush.bf16.msra.mxu1 %v2890_v46  ;;  %1551 = vmatpush.bf16.msra.mxu3 %v2894_v49  ;;  %v3292_v46 = vld [vmem:[#allocation8 + $0xb4] sm:$0xf0] }
  0xbc   :  { %v711_v6 = vpop.f32.mrf.mxu0  ;;  %v737_v7 = vpop.f32.mrf.mxu2 }
  0xbd   :  { %v725_v12 = vpop.f32.mrf.mxu1  ;;  %v751_v21 = vpop.f32.mrf.mxu3  ;;  %v738_v27 = vadd.f32 %v737_v7, %v724_v20  ;;  %1524 = vmatpush.bf16.msra.mxu1 %v2866_v55  ;;  %1552 = vmatpush.bf16.msra.mxu3 %v2870_v62  ;;  %v2818_v20 = vor.u32 %v3327_v19, %v2817_v18  ;;  %v3286_v55 = vld [vmem:[#allocation8 + $0x84] sm:$0xf0] }
  0xbe   :  { %v726_v28 = vadd.f32 %v725_v12, %v711_v6  ;;  %v2843_v6 = vld [vmem:[#allocation8 + $0x200] sm:$0xf0]  ;;  %v2778_v12 = vor.u32 %v3316_v63, %v2777_v61  ;;  %v2633_v63 = vld [vmem:[#allocation8 + $0x40] sm:$0xf] }
  0xbf   :  { %v752_v37 = vadd.f32 %v751_v21, %v738_v27  ;;  %v2846_v11 = vor.u32 %v3330_v5, %v2843_v6  ;;  %v2729_v21 = vld [vmem:[#allocation8 + $0x100] sm:$0xf]  ;;  %v2731_v27 = vld [vmem:[#allocation8 + $0x118] sm:$0xf0] }
  0xc0   :  { %v2730_v36 = vor.u32 %v3304_v25, %v2729_v21  ;;  %v3364_v25 = vld [vmem:[#allocation8 + $0x2f4] sm:$0xf0] }
  0xc1   :  { %1525 = vmatpush.bf16.msra.mxu1 %v2842_v4  ;;  %1553 = vmatpush.bf16.msra.mxu3 %v2846_v11 }
  0xc4   :  { %v739_v33 = vpop.f32.mrf.mxu2 }
  0xc5   :  { %v740_v41 = vadd.f32 %v739_v33, %v726_v28  ;;  %v753_v45 = vpop.f32.mrf.mxu3  ;;  %1526 = vmatpush.bf16.msra.mxu1 %v2818_v20  ;;  %1554 = vmatpush.bf16.msra.mxu3 %v2822_v39  ;;  %v2795_v33 = vld [vmem:[#allocation8 + $0x1a0] sm:$0xf0] }
  0xc6   :  { %v2798_v34 = vor.u32 %v3318_v31, %v2795_v33 }
  0xc7   :  { %v754_v50 = vadd.f32 %v753_v45, %v740_v41  ;;  %v3295_v41 = vld [vmem:[#allocation8 + $0xd4] sm:$0xf]  ;;  %v2681_v45 = vld [vmem:[#allocation8 + $0xa0] sm:$0xf] }
  0xc8   :  { %v2710_v44 = vor.u32 %v3295_v41, %v2707_v42  ;;  %v2682_v52 = vor.u32 %v3292_v46, %v2681_v45  ;;  %v2921_v41 = vld [vmem:[#allocation8 + $0x280] sm:$0xf]  ;;  %v3352_v42 = vld [vmem:[#allocation8 + $0x294] sm:$0xf0]  ;;  %v2897_v46 = vld [vmem:[#allocation8 + $0x250] sm:$0xf] }
  0xc9   :  { %1555 = vmatpush.bf16.msra.mxu3 %v2798_v34  ;;  %v3358_v34 = vld [vmem:[#allocation8 + $0x2c4] sm:$0xf0] }
  0xd4   :  { %v765_v32 = vpop.f32.mrf.mxu0 }
  0xd5   :  { %v779_v38 = vpop.f32.mrf.mxu1  ;;  %v766_v48 = vadd.f32 %v765_v32, %v752_v37  ;;  %v2794_v32 = vor.u32 %v3321_v30, %v2793_v29  ;;  %v2734_v37 = vor.u32 %v3301_v26, %v2731_v27  ;;  %v3361_v26 = vld [vmem:[#allocation8 + $0x2e4] sm:$0xf]  ;;  %v2971_v27 = vld [vmem:[#allocation8 + $0x2f8] sm:$0xf0] }
  0xd6   :  { %v2974_v31 = vor.u32 %v3361_v26, %v2971_v27  ;;  %v3386_v26 = vld [vmem:[#allocation9 + $0xa8] sm:$0xff]  ;;  %v3375_v27 = vld [vmem:[#allocation9 + $0x50] sm:$0xff] }
  0xd7   :  { %v780_v57 = vadd.f32 %v779_v38, %v766_v48  ;;  %v2705_v38 = vld [vmem:[#allocation8 + $0xd0] sm:$0xf]  ;;  %1527 = vmatpush.bf16.msra.mxu1 %v2794_v32  ;;  %v2683_v48 = vld [vmem:[#allocation8 + $0xb8] sm:$0xf0] }
  0xd8   :  { %v2706_v43 = vor.u32 %v3298_v40, %v2705_v38  ;;  %v2686_v53 = vor.u32 %v3289_v47, %v2683_v48  ;;  %v2945_v32 = vld [vmem:[#allocation8 + $0x2b0] sm:$0xf]  ;;  %v3346_v47 = vld [vmem:[#allocation8 + $0x264] sm:$0xf0]  ;;  %v3343_v48 = vld [vmem:[#allocation8 + $0x254] sm:$0xf] }
  0xd9   :  { %v868_v7 = vmax.f32 %v780_v57, 0.0  ;;  %v2659_v57 = vld [vmem:[#allocation8 + $0x88] sm:$0xf0]  ;;  %v2946_v38 = vor.u32 %v3358_v34, %v2945_v32  ;;  %v3404_v34 = vld [vmem:[#allocation9 + $0x138] sm:$0xff] }
  0xda   :  { %v2662_v62 = vor.u32 %v3283_v56, %v2659_v57  ;;  %v3394_v32 = vld [vmem:[#allocation9 + $0xe8] sm:$0xff] }
  0xdc   :  { %v767_v54 = vpop.f32.mrf.mxu0  ;;  %v793_v22 = vpop.f32.mrf.mxu2 }
  0xdd   :  { %v768_v58 = vadd.f32 %v767_v54, %v754_v50  ;;  %v781_v60 = vpop.f32.mrf.mxu1  ;;  %v807_v28 = vpop.f32.mrf.mxu3  ;;  %v2657_v54 = vld [vmem:[#allocation8 + $0x70] sm:$0xf] }
  0xde   :  { %v2658_v61 = vor.u32 %v3286_v55, %v2657_v54  ;;  %v3337_v54 = vld [vmem:[#allocation8 + $0x224] sm:$0xf]  ;;  %v2875_v55 = vld [vmem:[#allocation8 + $0x238] sm:$0xf0] }
  0xdf   :  { %v782_v59 = vadd.f32 %v781_v60, %v768_v58  ;;  %v808_v60 = vadd.f32 %v807_v28, %v793_v22  ;;  %v2878_v57 = vor.u32 %v3337_v54, %v2875_v55  ;;  %v3390_v54 = vld [vmem:[#allocation9 + $0xc8] sm:$0xff] }
  0xe0   :  { %v3410_v55 = vld [vmem:[#allocation9 + $0x168] sm:$0xff] }
  0xe1   :  { %v870_v8 = vmax.f32 %v782_v59, 0.0  ;;  %v3277_v59 = vld [vmem:[#allocation8 + $0x44] sm:$0xf] }
  0xe3   :  { %v3638_v16 = vpack.c.bf16 %v870_v8, %v868_v7  ;;  %v2634_v7 = vor.u32 %v3280_v1, %v2633_v63  ;;  %v2638_v8 = vor.u32 %v3277_v59, %v2635_v2  ;;  %v2825_v1 = vld [vmem:[#allocation8 + $0x1c0] sm:$0xf]  ;;  %v3328_v59 = vld [vmem:[#allocation8 + $0x1d4] sm:$0xf0]  ;;  %v3325_v2 = vld [vmem:[#allocation8 + $0x1c4] sm:$0xf] }
  0xe4   :  { %v795_v49 = vpop.f32.mrf.mxu2 }
  0xe5   :  { %1458 = vmatmul.bf16.vlgmr.msrb.gmra.mxu0 %v3638_v16  ;;  %1486 = vmatmul.bf16.vlgmr.msrb.gmra.mxu2 %v3638_v16  ;;  %v809_v50 = vpop.f32.mrf.mxu3 }
  0xe6   :  { %1562 = vmatpush.bf16.msrb.mxu0 %v2778_v12  ;;  %1590 = vmatpush.bf16.msrb.mxu2 %v2782_v13  ;;  %v810_v5 = vadd.f32 %v809_v50, %v795_v49  ;;  %v3274_v13 = vld [vmem:[#allocation8 + $0x24] sm:$0xf0]  ;;  %v2899_v49 = vld [vmem:[#allocation8 + $0x268] sm:$0xf0]  ;;  %v2898_v50 = vor.u32 %v3346_v47, %v2897_v46  ;;  %v3391_v46 = vld [vmem:[#allocation9 + $0xd0] sm:$0xff] }
  0xe7   :  { %v2610_v19 = vor.u32 %v3274_v13, %v2609_v9  ;;  %v2803_v9 = vld [vmem:[#allocation8 + $0x1a8] sm:$0xf0]  ;;  %v3372_v13 = vld [vmem:[#allocation9 + $0x38] sm:$0xff]  ;;  %v3411_v47 = vld [vmem:[#allocation9 + $0x170] sm:$0xff] }
  0xea   :  { %1563 = vmatpush.bf16.msrb.mxu0 %v2754_v23  ;;  %1591 = vmatpush.bf16.msrb.mxu2 %v2758_v24  ;;  %v2969_v23 = vld [vmem:[#allocation8 + $0x2e0] sm:$0xf] }
  0xeb   :  { %v2970_v30 = vor.u32 %v3364_v25, %v2969_v23  ;;  %v3376_v23 = vld [vmem:[#allocation9 + $0x58] sm:$0xff]  ;;  %v3366_v25 = vld [vmem:[#allocation9 + $0x8] sm:$0xff] }
  0xee   :  { %1564 = vmatpush.bf16.msrb.mxu0 %v2730_v36  ;;  %1592 = vmatpush.bf16.msrb.mxu2 %v2734_v37  ;;  %v3355_v36 = vld [vmem:[#allocation8 + $0x2b4] sm:$0xf]  ;;  %v2947_v37 = vld [vmem:[#allocation8 + $0x2c8] sm:$0xf0] }
  0xef   :  { %v2950_v40 = vor.u32 %v3355_v36, %v2947_v37  ;;  %v3373_v37 = vld [vmem:[#allocation9 + $0x40] sm:$0xff] }
  0xf2   :  { %1565 = vmatpush.bf16.msrb.mxu0 %v2706_v43  ;;  %1593 = vmatpush.bf16.msrb.mxu2 %v2710_v44  ;;  %v3349_v43 = vld [vmem:[#allocation8 + $0x284] sm:$0xf]  ;;  %v2923_v44 = vld [vmem:[#allocation8 + $0x298] sm:$0xf0] }
  0xf3   :  { %v2926_v45 = vor.u32 %v3349_v43, %v2923_v44  ;;  %v3412_v43 = vld [vmem:[#allocation9 + $0x178] sm:$0xff] }
  0xf4   :  { %v821_v51 = vpop.f32.mrf.mxu0 }
  0xf5   :  { %v835_v58 = vpop.f32.mrf.mxu1  ;;  %1514 = vmatmul.bf16.vlgmr.msra.gmra.mxu0 %v3638_v16  ;;  %1542 = vmatmul.bf16.vlgmr.msra.gmra.mxu2 %v3638_v16  ;;  %v822_v0 = vadd.f32 %v821_v51, %v808_v60  ;;  %v2902_v51 = vor.u32 %v3343_v48, %v2899_v49  ;;  %v3334_v60 = vld [vmem:[#allocation8 + $0x204] sm:$0xf0] }
  0xf6   :  { %1566 = vmatpush.bf16.msrb.mxu0 %v2682_v52  ;;  %1594 = vmatpush.bf16.msrb.mxu2 %v2686_v53  ;;  %v2873_v52 = vld [vmem:[#allocation8 + $0x220] sm:$0xf]  ;;  %v3340_v53 = vld [vmem:[#allocation8 + $0x234] sm:$0xf0] }
  0xf7   :  { %v836_v11 = vadd.f32 %v835_v58, %v822_v0  ;;  %v2874_v56 = vor.u32 %v3340_v53, %v2873_v52  ;;  %v2849_v58 = vld [vmem:[#allocation8 + $0x1f0] sm:$0xf]  ;;  %v3401_v52 = vld [vmem:[#allocation9 + $0x120] sm:$0xff] }
  0xf8   :  { %v2850_v63 = vor.u32 %v3334_v60, %v2849_v58  ;;  %v3646_v53 = vld [vmem:[#allocation3] sm:$0xff]  ;;  %v3400_v58 = vld [vmem:[#allocation9 + $0x118] sm:$0xff] }
  0xfa   :  { %1567 = vmatpush.bf16.msrb.mxu0 %v2658_v61  ;;  %1595 = vmatpush.bf16.msrb.mxu2 %v2662_v62  ;;  %v3331_v61 = vld [vmem:[#allocation8 + $0x1f4] sm:$0xf]  ;;  %v2851_v62 = vld [vmem:[#allocation8 + $0x208] sm:$0xf0] }
  0xfb   :  { %v2854_v0 = vor.u32 %v3331_v61, %v2851_v62  ;;  %v91_v62 = vld [vmem:[#allocation3 + $0x18] sm:$0xff] }
  0xfc   :  { %v849_v3 = vpop.f32.mrf.mxu2  ;;  %v823_v6 = vpop.f32.mrf.mxu0 }
  0xfd   :  { %v863_v4 = vpop.f32.mrf.mxu3  ;;  %v824_v12 = vadd.f32 %v823_v6, %v810_v5  ;;  %v850_v10 = vadd.f32 %v849_v3, %v836_v11  ;;  %v837_v18 = vpop.f32.mrf.mxu1  ;;  %v2827_v3 = vld [vmem:[#allocation8 + $0x1d8] sm:$0xf0]  ;;  %v2826_v5 = vor.u32 %v3328_v59, %v2825_v1  ;;  %v2801_v6 = vld [vmem:[#allocation8 + $0x190] sm:$0xf]  ;;  %v3409_v1 = vld [vmem:[#allocation9 + $0x160] sm:$0xff] }
  0xfe   :  { %1568 = vmatpush.bf16.msrb.mxu0 %v2634_v7  ;;  %1596 = vmatpush.bf16.msrb.mxu2 %v2638_v8  ;;  %v3322_v7 = vld [vmem:[#allocation8 + $0x1a4] sm:$0xf0]  ;;  %v3319_v8 = vld [vmem:[#allocation8 + $0x194] sm:$0xf] }
  0xff   :  { %v838_v20 = vadd.f32 %v837_v18, %v824_v12  ;;  %v864_v21 = vadd.f32 %v863_v4, %v850_v10  ;;  %v2830_v4 = vor.u32 %v3325_v2, %v2827_v3  ;;  %v2802_v11 = vor.u32 %v3322_v7, %v2801_v6  ;;  %v3370_v10 = vld [vmem:[#allocation9 + $0x28] sm:$0xff]  ;;  %v3379_v18 = vld [vmem:[#allocation9 + $0x70] sm:$0xff] }
 0x100   :  { %v2806_v12 = vor.u32 %v3319_v8, %v2803_v9  ;;  %v3652_v7 = vstv %s3676_s0  ;;  %v1631_v9 = vunpack.c.h.bf16 %v3646_v53 }
 0x101   :  { %v869_v28 = vmax.f32 %v864_v21, 0.0  ;;  %v3377_v21 = vld [vmem:[#allocation9 + $0x60] sm:$0xff] }
 0x102   :  { %1569 = vmatpush.bf16.msrb.mxu0 %v2610_v19  ;;  %1597 = vmatpush.bf16.msrb.mxu2 %v2614_v17  ;;  %v3369_v19 = vld [vmem:[#allocation9 + $0x20] sm:$0xff]  ;;  %v3378_v17 = vld [vmem:[#allocation9 + $0x68] sm:$0xff] }
 0x104   :  { %v851_v35 = vpop.f32.mrf.mxu2 }
 0x105   :  { %v852_v39 = vadd.f32 %v851_v35, %v838_v20  ;;  %v865_v22 = vpop.f32.mrf.mxu3  ;;  %1570 = vmatmul.bf16.vlgmr.msrb.gmra.mxu0 %v3638_v16  ;;  %1598 = vmatmul.bf16.vlgmr.msrb.gmra.mxu2 %v3638_v16  ;;  %v2922_v16 = vor.u32 %v3352_v42, %v2921_v41  ;;  %v3368_v20 = vld [vmem:[#allocation9 + $0x18] sm:$0xff]  ;;  %v3403_v41 = vld [vmem:[#allocation9 + $0x130] sm:$0xff] }
 0x106   :  { %2074 = vmatpush.bf16.msra.mxu0 %v3372_v13  ;;  %v3388_v35 = vld [vmem:[#allocation9 + $0xb8] sm:$0xff] }
 0x107   :  { %v866_v24 = vadd.f32 %v865_v22, %v852_v39  ;;  %2102 = vmatpush.bf16.msra.mxu2 %v3388_v35  ;;  %v3367_v39 = vld [vmem:[#allocation9 + $0x10] sm:$0xff]  ;;  %v3392_v42 = vld [vmem:[#allocation9 + $0xd8] sm:$0xff] }
 0x108   :  { %v3387_v22 = vld [vmem:[#allocation9 + $0xb0] sm:$0xff] }
 0x109   :  { %v871_v29 = vmax.f32 %v866_v24, 0.0  ;;  %v3396_v24 = vld [vmem:[#allocation9 + $0xf8] sm:$0xff]  ;;  %v3407_v35 = vld [vmem:[#allocation9 + $0x150] sm:$0xff] }
 0x10a   :  { %2075 = vmatpush.bf16.msra.mxu0 %v3371_v14 }
 0x10b   :  { %v873_v33 = vpack.c.bf16 %v871_v29, %v869_v28  ;;  %2103 = vmatpush.bf16.msra.mxu2 %v3387_v22  ;;  %v3395_v28 = vld [vmem:[#allocation9 + $0xf0] sm:$0xff]  ;;  %v3365_v29 = vld [vmem:[#allocation9] sm:$0xff] }
 0x10d   :  { %1472 = vmatmul.bf16.vlgmr.msrb.gmra.mxu1 %v873_v33  ;;  %1500 = vmatmul.bf16.vlgmr.msrb.gmra.mxu3 %v873_v33 }
 0x10e   :  { %1576 = vmatpush.bf16.msrb.mxu1 %v2970_v30  ;;  %1604 = vmatpush.bf16.msrb.mxu3 %v2974_v31  ;;  %v3385_v30 = vld [vmem:[#allocation9 + $0xa0] sm:$0xff]  ;;  %v3374_v31 = vld [vmem:[#allocation9 + $0x48] sm:$0xff] }
 0x10f   :  { %2076 = vmatpush.bf16.msra.mxu0 %v3370_v10  ;;  %2104 = vmatpush.bf16.msra.mxu2 %v3386_v26  ;;  %v3397_v26 = vld [vmem:[#allocation9 + $0x100] sm:$0xff] }
 0x112   :  { %1577 = vmatpush.bf16.msrb.mxu1 %v2946_v38  ;;  %1605 = vmatpush.bf16.msrb.mxu3 %v2950_v40  ;;  %v3393_v38 = vld [vmem:[#allocation9 + $0xe0] sm:$0xff]  ;;  %v3383_v40 = vld [vmem:[#allocation9 + $0x90] sm:$0xff] }
 0x113   :  { %2077 = vmatpush.bf16.msra.mxu0 %v3369_v19  ;;  %2105 = vmatpush.bf16.msra.mxu2 %v3385_v30 }
 0x116   :  { %1578 = vmatpush.bf16.msrb.mxu1 %v2922_v16  ;;  %1606 = vmatpush.bf16.msrb.mxu3 %v2926_v45  ;;  %v3382_v16 = vld [vmem:[#allocation9 + $0x88] sm:$0xff] }
 0x117   :  { %2078 = vmatpush.bf16.msra.mxu0 %v3368_v20  ;;  %v3402_v45 = vld [vmem:[#allocation9 + $0x128] sm:$0xff]  ;;  %v1637_v20 = vunpack.c.h.bf16 %v91_v62 }
 0x11a   :  { %1579 = vmatpush.bf16.msrb.mxu1 %v2898_v50  ;;  %1607 = vmatpush.bf16.msrb.mxu3 %v2902_v51  ;;  %v3381_v51 = vld [vmem:[#allocation9 + $0x80] sm:$0xff] }
 0x11b   :  { %2079 = vmatpush.bf16.msra.mxu0 %v3367_v39 }
 0x11d   :  { %1528 = vmatmul.bf16.vlgmr.msra.gmra.mxu1 %v873_v33  ;;  %1556 = vmatmul.bf16.vlgmr.msra.gmra.mxu3 %v873_v33 }
 0x11e   :  { %1580 = vmatpush.bf16.msrb.mxu1 %v2874_v56  ;;  %1608 = vmatpush.bf16.msrb.mxu3 %v2878_v57  ;;  %v1630_v57 = vunpack.c.l.bf16 %v3646_v53 }
 0x11f   :  { %2080 = vmatpush.bf16.msra.mxu0 %v3366_v25 }
 0x122   :  { %1581 = vmatpush.bf16.msrb.mxu1 %v2850_v63  ;;  %1609 = vmatpush.bf16.msrb.mxu3 %v2854_v0  ;;  %v3389_v0 = vld [vmem:[#allocation9 + $0xc0] sm:$0xff] }
 0x123   :  { %2081 = vmatpush.bf16.msra.mxu0 %v3365_v29 }
 0x126   :  { %1582 = vmatpush.bf16.msrb.mxu1 %v2826_v5  ;;  %1610 = vmatpush.bf16.msrb.mxu3 %v2830_v4  ;;  %v1636_v5 = vunpack.c.l.bf16 %v91_v62  ;;  %v3399_v4 = vld [vmem:[#allocation9 + $0x110] sm:$0xff] }
 0x127   :  { %2130 = vmatpush.bf16.msrb.mxu0 %v3404_v34 }
 0x12a   :  { %1583 = vmatpush.bf16.msrb.mxu1 %v2802_v11  ;;  %1611 = vmatpush.bf16.msrb.mxu3 %v2806_v12  ;;  %v3408_v12 = vld [vmem:[#allocation9 + $0x158] sm:$0xff] }
 0x12b   :  { %2131 = vmatpush.bf16.msrb.mxu0 %v3403_v41 }
 0x12d   :  { %1584 = vmatmul.bf16.vlgmr.msrb.gmra.mxu1 %v873_v33  ;;  %1612 = vmatmul.bf16.vlgmr.msrb.gmra.mxu3 %v873_v33  ;;  %v3384_v33 = vld [vmem:[#allocation9 + $0x98] sm:$0xff] }
 0x12e   :  { %2088 = vmatpush.bf16.msra.mxu1 %v3380_v15  ;;  %2116 = vmatpush.bf16.msra.mxu3 %v3396_v24  ;;  %v3398_v15 = vld [vmem:[#allocation9 + $0x108] sm:$0xff] }
 0x12f   :  { %2106 = vmatpush.bf16.msra.mxu2 %v3384_v33  ;;  %2132 = vmatpush.bf16.msrb.mxu0 %v3402_v45 }
 0x132   :  { %2089 = vmatpush.bf16.msra.mxu1 %v3379_v18  ;;  %2117 = vmatpush.bf16.msra.mxu3 %v3395_v28 }
 0x133   :  { %2107 = vmatpush.bf16.msra.mxu2 %v3383_v40  ;;  %2133 = vmatpush.bf16.msrb.mxu0 %v3401_v52 }
 0x136   :  { %2090 = vmatpush.bf16.msra.mxu1 %v3378_v17  ;;  %2118 = vmatpush.bf16.msra.mxu3 %v3394_v32 }
 0x137   :  { %2108 = vmatpush.bf16.msra.mxu2 %v3382_v16  ;;  %2134 = vmatpush.bf16.msrb.mxu0 %v3400_v58 }
 0x13a   :  { %2091 = vmatpush.bf16.msra.mxu1 %v3377_v21  ;;  %2119 = vmatpush.bf16.msra.mxu3 %v3393_v38  ;;  %v92_v38 = vld [vmem:[#allocation3 + $0x20] sm:$0xff] }
 0x13b   :  { %2109 = vmatpush.bf16.msra.mxu2 %v3381_v51  ;;  %2135 = vmatpush.bf16.msrb.mxu0 %v3399_v4 }
 0x13e   :  { %2092 = vmatpush.bf16.msra.mxu1 %v3376_v23  ;;  %2120 = vmatpush.bf16.msra.mxu3 %v3392_v42 }
 0x13f   :  { %2136 = vmatpush.bf16.msrb.mxu0 %v3398_v15 }
 0x142   :  { %2093 = vmatpush.bf16.msra.mxu1 %v3375_v27  ;;  %2121 = vmatpush.bf16.msra.mxu3 %v3391_v46  ;;  %v89_v27 = vld [vmem:[#allocation3 + $0x8] sm:$0xff]  ;;  %v1638_v46 = vunpack.c.l.bf16 %v92_v38 }
 0x143   :  { %2137 = vmatpush.bf16.msrb.mxu0 %v3397_v26 }
 0x146   :  { %2094 = vmatpush.bf16.msra.mxu1 %v3374_v31  ;;  %2122 = vmatpush.bf16.msra.mxu3 %v3390_v54  ;;  %v3406_v31 = vld [vmem:[#allocation9 + $0x148] sm:$0xff] }
 0x14a   :  { %2095 = vmatpush.bf16.msra.mxu1 %v3373_v37  ;;  %2123 = vmatpush.bf16.msra.mxu3 %v3389_v0 }
 0x14e   :  { %2144 = vmatpush.bf16.msrb.mxu1 %v3412_v43  ;;  %v3405_v43 = vld [vmem:[#allocation9 + $0x140] sm:$0xff] }
 0x152   :  { %2145 = vmatpush.bf16.msrb.mxu1 %v3411_v47 }
 0x156   :  { %2146 = vmatpush.bf16.msrb.mxu1 %v3410_v55 }
 0x15a   :  { %2147 = vmatpush.bf16.msrb.mxu1 %v3409_v1 }
 0x15e   :  { %2148 = vmatpush.bf16.msrb.mxu1 %v3408_v12  ;;  %v93_v12 = vld [vmem:[#allocation3 + $0x28] sm:$0xff] }
 0x162   :  { %v1459_v36 = vpop.f32.mrf.mxu0  ;;  %2149 = vmatpush.bf16.msrb.mxu1 %v3407_v35 }
 0x166   :  { %2150 = vmatpush.bf16.msrb.mxu1 %v3406_v31 }
 0x168   :  { %v1487_v44 = vpop.f32.mrf.mxu2 }
 0x16a   :  { %v1461_v48 = vpop.f32.mrf.mxu0  ;;  %2151 = vmatpush.bf16.msrb.mxu1 %v3405_v43 }
 0x170   :  { %v1489_v60 = vpop.f32.mrf.mxu2 }
 0x172   :  { %v1515_v6 = vpop.f32.mrf.mxu0 }
 0x178   :  { %v1543_v21 = vpop.f32.mrf.mxu2 }
 0x17a   :  { %v1517_v32 = vpop.f32.mrf.mxu0 }
 0x182   :  { %v1571_v54 = vpop.f32.mrf.mxu0 }
 0x18a   :  { %v1473_v49 = vpop.f32.mrf.mxu1 }
 0x18b   :  { %v1474_v50 = vadd.f32 %v1473_v49, %v1459_v36  ;;  %v1632_v36 = vunpack.c.l.bf16 %v89_v27 }
 0x18d   :  { %v1618_v56 = vmax.f32 %v1474_v50, 0.0  ;;  %v1633_v50 = vunpack.c.h.bf16 %v89_v27 }
 0x18f   :  { %v1643_v2 = vsub.f32 %v1618_v56, %v1630_v57 }
 0x190   :  { %v1501_v61 = vpop.f32.mrf.mxu3 }
 0x191   :  { %v1502_v63 = vadd.f32 %v1501_v61, %v1487_v44  ;;  %v1656_v13 = vmul.f32 %v3652_v7, %v1643_v2 }
 0x192   :  { %v1475_v59 = vpop.f32.mrf.mxu1 }
 0x193   :  { %v1476_v3 = vadd.f32 %v1475_v59, %v1461_v48  ;;  %v1619_v8 = vmax.f32 %v1502_v63, 0.0  ;;  %v1668_v22 = vadd.f32 %v1656_v13, %v1630_v57  ;;  %v1545_v48 = vpop.f32.mrf.mxu2  ;;  %v90_v59 = vld [vmem:[#allocation3 + $0x10] sm:$0xff] }
 0x195   :  { %v1624_v11 = vmax.f32 %v1476_v3, 0.0  ;;  %v1644_v18 = vsub.f32 %v1619_v8, %v1631_v9 }
 0x197   :  { %v1649_v14 = vsub.f32 %v1624_v11, %v1636_v5  ;;  %v1657_v28 = vmul.f32 %v3652_v7, %v1644_v18 }
 0x198   :  { %v1503_v10 = vpop.f32.mrf.mxu3 }
 0x199   :  { %v1662_v19 = vmul.f32 %v3652_v7, %v1649_v14  ;;  %v1504_v17 = vadd.f32 %v1503_v10, %v1489_v60  ;;  %v1669_v40 = vadd.f32 %v1657_v28, %v1631_v9  ;;  %v1639_v60 = vunpack.c.h.bf16 %v92_v38  ;;  %v1573_v10 = vpop.f32.mrf.mxu0 }
 0x19a   :  { %v1529_v39 = vpop.f32.mrf.mxu1  ;;  %v1634_v9 = vunpack.c.l.bf16 %v90_v59 }
 0x19b   :  { %v1674_v23 = vadd.f32 %v1662_v19, %v1636_v5  ;;  %v1625_v24 = vmax.f32 %v1504_v17, 0.0  ;;  %v1530_v25 = vadd.f32 %v1529_v39, %v1515_v6  ;;  %v1599_v4 = vpop.f32.mrf.mxu2  ;;  %v1635_v39 = vunpack.c.h.bf16 %v90_v59 }
 0x19d   :  { %v1650_v29 = vsub.f32 %v1625_v24, %v1637_v20  ;;  %v1680_v30 = vpack.c.bf16 %v1674_v23, %v1668_v22  ;;  %v1620_v34 = vmax.f32 %v1530_v25, 0.0 }
 0x19f   :  { %v1663_v33 = vmul.f32 %v3652_v7, %v1650_v29  ;;  %2082 = vmatmul.bf16.vlgmr.msra.gmra.mxu0 %v1680_v30  ;;  %v1645_v16 = vsub.f32 %v1620_v34, %v1632_v36  ;;  %v1641_v30 = vunpack.c.h.bf16 %v93_v12 }
 0x1a0   :  { %v1557_v37 = vpop.f32.mrf.mxu3 }
 0x1a1   :  { %v1675_v41 = vadd.f32 %v1663_v33, %v1637_v20  ;;  %v1558_v42 = vadd.f32 %v1557_v37, %v1543_v21  ;;  %v1658_v52 = vmul.f32 %v3652_v7, %v1645_v16  ;;  %v1640_v20 = vunpack.c.l.bf16 %v93_v12 }
 0x1a2   :  { %v1531_v44 = vpop.f32.mrf.mxu1 }
 0x1a3   :  { %v1532_v45 = vadd.f32 %v1531_v44, %v1517_v32  ;;  %v1681_v47 = vpack.c.bf16 %v1675_v41, %v1669_v40  ;;  %v1621_v49 = vmax.f32 %v1558_v42, 0.0  ;;  %v1670_v62 = vadd.f32 %v1658_v52, %v1632_v36  ;;  %v1601_v25 = vpop.f32.mrf.mxu2 }
 0x1a5   :  { %v1626_v51 = vmax.f32 %v1532_v45, 0.0  ;;  %2096 = vmatmul.bf16.vlgmr.msra.gmra.mxu1 %v1681_v47  ;;  %v1646_v56 = vsub.f32 %v1621_v49, %v1633_v50  ;;  %v3424_v45 = vld [vmem:[%s3681_s5] ss:$0 sm:$0xff]  ;;  %s3563_s5 = smov [#allocation11]  }
 0x1a6   :  { %s2166_s22 = sshll.u32 %s3563_s5, 4  ;;  %s2167_s22 = int_to_ptr.vmem [resolvable:$true] %s2166_s22 }
 0x1a7   :  { %v1651_v53 = vsub.f32 %v1626_v51, %v1638_v46  ;;  %v1659_v2 = vmul.f32 %v3652_v7, %v1646_v56 }
 0x1a8   :  { %v1559_v55 = vpop.f32.mrf.mxu3 }
 0x1a9   :  { %v1664_v57 = vmul.f32 %v3652_v7, %v1651_v53  ;;  %v1560_v58 = vadd.f32 %v1559_v55, %v1545_v48  ;;  %v1671_v13 = vadd.f32 %v1659_v2, %v1633_v50 }
 0x1aa   :  { %v1585_v61 = vpop.f32.mrf.mxu1 }
 0x1ab   :  { %v1676_v63 = vadd.f32 %v1664_v57, %v1638_v46  ;;  %v1627_v0 = vmax.f32 %v1560_v58, 0.0  ;;  %v1586_v1 = vadd.f32 %v1585_v61, %v1571_v54 }
 0x1ad   :  { %v1652_v3 = vsub.f32 %v1627_v0, %v1639_v60  ;;  %v1682_v5 = vpack.c.bf16 %v1676_v63, %v1670_v62  ;;  %v1622_v8 = vmax.f32 %v1586_v1, 0.0 }
 0x1af   :  { %v1665_v6 = vmul.f32 %v3652_v7, %v1652_v3  ;;  %2110 = vmatmul.bf16.vlgmr.msra.gmra.mxu2 %v1682_v5  ;;  %v1647_v19 = vsub.f32 %v1622_v8, %v1634_v9 }
 0x1b0   :  { %v1613_v11 = vpop.f32.mrf.mxu3 }
 0x1b1   :  { %v1677_v14 = vadd.f32 %v1665_v6, %v1639_v60  ;;  %v1614_v15 = vadd.f32 %v1613_v11, %v1599_v4  ;;  %v1660_v23 = vmul.f32 %v3652_v7, %v1647_v19 }
 0x1b2   :  { %v1587_v18 = vpop.f32.mrf.mxu1 }
 0x1b3   :  { %v1588_v17 = vadd.f32 %v1587_v18, %v1573_v10  ;;  %v1683_v35 = vpack.c.bf16 %v1677_v14, %v1671_v13  ;;  %v1623_v21 = vmax.f32 %v1614_v15, 0.0  ;;  %v1672_v31 = vadd.f32 %v1660_v23, %v1634_v9 }
 0x1b5   :  { %v1628_v22 = vmax.f32 %v1588_v17, 0.0  ;;  %2124 = vmatmul.bf16.vlgmr.msra.gmra.mxu3 %v1683_v35  ;;  %v1648_v27 = vsub.f32 %v1623_v21, %v1635_v39 }
 0x1b7   :  { %v1653_v24 = vsub.f32 %v1628_v22, %v1640_v20  ;;  %v1661_v34 = vmul.f32 %v3652_v7, %v1648_v27 }
 0x1b8   :  { %v1615_v26 = vpop.f32.mrf.mxu3 }
 0x1b9   :  { %v1666_v28 = vmul.f32 %v3652_v7, %v1653_v24  ;;  %v1616_v29 = vadd.f32 %v1615_v26, %v1601_v25  ;;  %v1673_v40 = vadd.f32 %v1661_v34, %v1635_v39 }
 0x1bb   :  { %v1678_v32 = vadd.f32 %v1666_v28, %v1640_v20  ;;  %v1629_v33 = vmax.f32 %v1616_v29, 0.0 }
 0x1bd   :  { %v1654_v36 = vsub.f32 %v1629_v33, %v1641_v30  ;;  %v1684_v37 = vpack.c.bf16 %v1678_v32, %v1672_v31 }
 0x1bf   :  { %v1667_v38 = vmul.f32 %v3652_v7, %v1654_v36  ;;  %2138 = vmatmul.bf16.vlgmr.msrb.gmra.mxu0 %v1684_v37 }
 0x1c1   :  { %v1679_v41 = vadd.f32 %v1667_v38, %v1641_v30 }
 0x1c3   :  { %v1685_v42 = vpack.c.bf16 %v1679_v41, %v1673_v40 }
 0x1c5   :  { %2152 = vmatmul.bf16.vlgmr.msrb.gmra.mxu1 %v1685_v42 }
 0x21c   :  { %v2083_v43 = vpop.f32.mrf.mxu0 }
 0x21d   :  { %v2084_v47 = vadd.f32 %v3424_v45, %v2083_v43 }
 0x222   :  { %v2097_v44 = vpop.f32.mrf.mxu1 }
 0x223   :  { %v2098_v50 = vadd.f32 %v2097_v44, %v2084_v47 }
 0x224   :  { %v2085_v16 = vpop.f32.mrf.mxu0 }
 0x225   :  { %v2086_v53 = vadd.f32 %v3424_v45, %v2085_v16 }
 0x22a   :  { %v2099_v48 = vpop.f32.mrf.mxu1 }
 0x22b   :  { %v2100_v57 = vadd.f32 %v2099_v48, %v2086_v53 }
 0x232   :  { %v2111_v46 = vpop.f32.mrf.mxu2 }
 0x233   :  { %v2112_v52 = vadd.f32 %v2111_v46, %v2098_v50 }
 0x238   :  { %v2125_v49 = vpop.f32.mrf.mxu3 }
 0x239   :  { %v2126_v7 = vadd.f32 %v2125_v49, %v2112_v52 }
 0x23a   :  { %v2113_v55 = vpop.f32.mrf.mxu2 }
 0x23b   :  { %v2114_v61 = vadd.f32 %v2113_v55, %v2100_v57 }
 0x23c   :  { %v2139_v51 = vpop.f32.mrf.mxu0 }
 0x23d   :  { %v2140_v54 = vadd.f32 %v2139_v51, %v2126_v7 }
 0x240   :  { %v2127_v60 = vpop.f32.mrf.mxu3 }
 0x241   :  { %v2128_v0 = vadd.f32 %v2127_v60, %v2114_v61 }
 0x242   :  { %v2153_v56 = vpop.f32.mrf.mxu1 }
 0x243   :  { %v2154_v58 = vadd.f32 %v2153_v56, %v2140_v54 }
 0x244   :  { %v2141_v63 = vpop.f32.mrf.mxu0 }
 0x245   :  { %v2158_v62 = vmax.f32 %v2154_v58, 0.0  ;;  %v2142_v1 = vadd.f32 %v2141_v63, %v2128_v0 }
 0x247   :  { %2160 = vst [vmem:[#allocation11] sm:$0xff] %v2158_v62 }
 0x24a   :  { %v2155_v59 = vpop.f32.mrf.mxu1 }
 0x24b   :  { %v2156_v2 = vadd.f32 %v2155_v59, %v2142_v1 }
 0x24d   :  { %v2159_v3 = vmax.f32 %v2156_v2, 0.0 }
 0x24f   :  { %2161 = vst [vmem:[#allocation11 + $0x8] sm:$0xff] %v2159_v3 }
 0x250   :  { %2174 = dma.vmem_to_hbm [thread:$0]  %s2167_s22, 256, %s2169_s25, [#allocation5], %s3554_s29, %s3554_s29, %s3555_s30  }
 0x251   :  { %3551 = dma.done.wait [#allocation5], 256  }
 0x252   :  { %3552 = vsyncadd [#allocation5], 4294967040 }
 0x253   :  { %2179 = vsyncpa [#allocation4], 1 }
 0x254   :  { %2180 = vsyncpa [#allocation7], 1 }
 0x255   :  { %2181 = vsyncpa [#allocation10], 1 }
 0x256   :  { %2182 = vsyncpa [#allocation5], 1 }

</bundles_post_ra>
